<compile_context>
chip_gen: v5e
topology: v5e:2x2
jax: 0.10.0
libtpu: 0.0.40
codegen_flags: <defaults>
</compile_context>

<pallas_src>
import functools

import jax
import jax.numpy as jnp
from jax.experimental import pallas as pl
from jax.experimental.pallas import tpu as pltpu

BN_EPS = 1e-5


def _round_up(x, m):
    return (x + m - 1) // m * m


@functools.lru_cache(maxsize=None)
def _vmem_limit_bytes():
    """Per-generation scoped-VMEM cap: ~3/4 of physical VMEM (96 MiB on v5e/v6e, 48 MiB
    on v7x), with a conservative fallback if the hardware query is unavailable."""
    try:
        cap = int(pltpu.get_tpu_info().vmem_capacity_bytes)
    except Exception:
        cap = 64 * 1024 * 1024
    return min(cap * 3 // 4, 100 * 1024 * 1024)


def _pick_tm(m):
    """Single grid step whenever the whole M fits comfortably in VMEM (forcing >=2 steps
    only pays extra per-step overhead and halves per-step MXU M-fill); tile only when the
    row dimension is genuinely large."""
    if m <= 1024:
        return m, m
    tm = 1024
    return tm, _round_up(m, tm)


# ----------------------------- Pallas kernels ------------------------------

def _fused_block_kernel(x_ref, wa_ref, sa_ref, ta_ref, w2_ref, s2_ref, t2_ref, o_ref, *, no):
    """Stage 1: patches @ [W_down | W_conv1] (K padded to 128, N = 2*no = 128), folded
    bias+BN affine, ReLU only on the conv1 half.  Stage 2: the 1x1 conv fused as a second
    MXU matmul against the block-diagonal [[I, 0], [0, W2]] weight (identity lanes pass
    through exactly), folded BN, ReLU only on the conv2 half.  Emits a single lane-dense
    [identity | h2] bf16 block."""
    acc = jnp.dot(x_ref[...], wa_ref[...], preferred_element_type=jnp.float32)
    acc = acc * sa_ref[...] + ta_ref[...]

    lane = jax.lax.broadcasted_iota(jnp.int32, acc.shape, 1)
    is_net = lane >= no                                         # conv1/conv2 half of the lanes
    h = jnp.where(is_net, jnp.maximum(acc, 0.0), acc)           # ReLU on the conv1 half only

    acc2 = jnp.dot(h.astype(jnp.bfloat16), w2_ref[...], preferred_element_type=jnp.float32)
    acc2 = acc2 * s2_ref[...] + t2_ref[...]
    out = jnp.where(is_net, jnp.maximum(acc2, 0.0), acc2)       # ReLU on the conv2 half only
    o_ref[...] = out.astype(o_ref.dtype)


def _conv3x3_res_kernel(x_ref, w_ref, s_ref, t_ref, o_ref, col_ref, *, oh, ow, cin, cres):
    """Direct 3x3 / stride-1 conv on one image: in-VMEM im2col into a (oh*ow, 9*cin)
    scratch (9 tap copies into one contiguous buffer) followed by ONE K = 9*cin matmul,
    then fused BN affine + ReLU + residual add with the downsample branch (channels
    [:cres] of the combined, spatially pre-padded input)."""
    x = x_ref[0]                                   # (oh+2, ow+2, cres+cin) bf16
    for t in range(9):                             # static unroll: 9 copies, no matmuls here
        di, dj = divmod(t, 3)
        col_ref[:, t * cin:(t + 1) * cin] = (
            x[di:di + oh, dj:dj + ow, cres:].reshape(oh * ow, cin))
    acc = jnp.dot(col_ref[...], w_ref[...], preferred_element_type=jnp.float32)
    acc = acc * s_ref[...] + t_ref[...]
    acc = jnp.maximum(acc, 0.0)
    res = x[1:1 + oh, 1:1 + ow, :cres].astype(jnp.float32).reshape(oh * ow, cres)
    o_ref[0] = acc + res


# ----------------------------- kernel wrappers ------------------------------

def pallas_fused_block(patches, wa, sa, ta, w2b, s2b, t2b, *, no):
    """[identity | h2] = fused(downsample ++ conv1 -> 1x1 conv2) in one pallas_call.
    patches: (M, K) bf16-able with K already zero-padded to a multiple of 128."""
    m, k = patches.shape
    n = wa.shape[1]
    assert n == 2 * no and w2b.shape == (n, n)
    tm, mp = _pick_tm(m)
    if mp != m:
        patches = jnp.pad(patches, ((0, mp - m), (0, 0)))
    cost = pl.CostEstimate(
        flops=2 * mp * k * n + 2 * mp * n * n, transcendentals=0,
        bytes_accessed=mp * k * 2 + (k * n + n * n) * 2 + 4 * n * 4 + mp * n * 2)
    const = dict(pipeline_mode=pl.Buffered(1))     # grid-invariant operands: single buffer
    out = pl.pallas_call(
        functools.partial(_fused_block_kernel, no=no),
        out_shape=jax.ShapeDtypeStruct((mp, n), jnp.bfloat16),
        grid=(mp // tm,),
        in_specs=[
            pl.BlockSpec((tm, k), lambda i: (i, 0)),
            pl.BlockSpec((k, n), lambda i: (0, 0), **const),
            pl.BlockSpec((1, n), lambda i: (0, 0), **const),
            pl.BlockSpec((1, n), lambda i: (0, 0), **const),
            pl.BlockSpec((n, n), lambda i: (0, 0), **const),
            pl.BlockSpec((1, n), lambda i: (0, 0), **const),
            pl.BlockSpec((1, n), lambda i: (0, 0), **const),
        ],
        out_specs=pl.BlockSpec((tm, n), lambda i: (i, 0)),
        compiler_params=pltpu.CompilerParams(
            dimension_semantics=("parallel",), vmem_limit_bytes=_vmem_limit_bytes()),
        cost_estimate=cost,
    )(patches.astype(jnp.bfloat16), wa.astype(jnp.bfloat16),
      sa.reshape(1, n).astype(jnp.float32), ta.reshape(1, n).astype(jnp.float32),
      w2b.astype(jnp.bfloat16),
      s2b.reshape(1, n).astype(jnp.float32), t2b.reshape(1, n).astype(jnp.float32))
    return out[:m] if mp != m else out


def pallas_conv3x3_residual(comb_padded, w9, scale, shift, *, oh, ow, cin, cres):
    """comb_padded: (N, OH+2, OW+2, cres+cin) bf16 = spatially padded [identity | h2].
    Returns (N, OH*OW, cout) f32 = ReLU(conv3x3(h2) * scale + shift) + identity."""
    n_img = comb_padded.shape[0]
    c_all = comb_padded.shape[-1]
    cout = w9.shape[1]
    assert cres == cout and c_all == cres + cin and w9.shape[0] == 9 * cin
    hp, wp = oh + 2, ow + 2
    cost = pl.CostEstimate(
        flops=2 * n_img * oh * ow * 9 * cin * cout, transcendentals=0,
        bytes_accessed=n_img * hp * wp * c_all * 2 + 9 * cin * cout * 2
                       + 2 * cout * 4 + n_img * oh * ow * cout * 4)
    const = dict(pipeline_mode=pl.Buffered(1))
    return pl.pallas_call(
        functools.partial(_conv3x3_res_kernel, oh=oh, ow=ow, cin=cin, cres=cres),
        out_shape=jax.ShapeDtypeStruct((n_img, oh * ow, cout), jnp.float32),
        grid=(n_img,),
        in_specs=[
            pl.BlockSpec((1, hp, wp, c_all), lambda b: (b, 0, 0, 0)),
            pl.BlockSpec((9 * cin, cout), lambda b: (0, 0), **const),
            pl.BlockSpec((1, cout), lambda b: (0, 0), **const),
            pl.BlockSpec((1, cout), lambda b: (0, 0), **const),
        ],
        out_specs=pl.BlockSpec((1, oh * ow, cout), lambda b: (b, 0, 0)),
        scratch_shapes=[pltpu.VMEM((oh * ow, 9 * cin), jnp.bfloat16)],
        compiler_params=pltpu.CompilerParams(
            dimension_semantics=("parallel",), vmem_limit_bytes=_vmem_limit_bytes()),
        cost_estimate=cost,
    )(comb_padded.astype(jnp.bfloat16), w9.astype(jnp.bfloat16),
      scale.reshape(1, cout).astype(jnp.float32),
      shift.reshape(1, cout).astype(jnp.float32))


# ----------------------------- conv glue ------------------------------

def _im2col(x_nhwc, kh, kw, stride, pad, k_pad=None):
    """bf16 NHWC -> patches (N*OH*OW, K), tap-major (kh, kw, C); K zero-padded to k_pad."""
    # TODO(synk): for v5e, fold this im2col into the matmul kernel (VMEM row slab) so the
    #             ~6.25x patch array is never written/re-read through HBM.
    n, h, w, c = x_nhwc.shape
    xp = jnp.pad(x_nhwc, ((0, 0), (pad, pad), (pad, pad), (0, 0)))
    oh = (h + 2 * pad - kh) // stride + 1
    ow = (w + 2 * pad - kw) // stride + 1
    cols = [xp[:, i:i + stride * oh:stride, j:j + stride * ow:stride, :]
            for i in range(kh) for j in range(kw)]
    k = kh * kw * c
    if k_pad is not None and k_pad > k:
        cols.append(jnp.zeros((n, oh, ow, k_pad - k), x_nhwc.dtype))
        k = k_pad
    patches = jnp.concatenate(cols, axis=-1).reshape(n * oh * ow, k)
    return patches, (n, oh, ow)


def _w_as_matrix(w_oihw):
    cout, cin, kh, kw = w_oihw.shape
    return jnp.transpose(w_oihw, (2, 3, 1, 0)).reshape(kh * kw * cin, cout)


def _bn_fold(conv_bias, gamma, beta, rmean, rvar):
    """Fold conv bias + eval-mode BatchNorm into a per-channel scale/shift."""
    s = gamma / jnp.sqrt(rvar + BN_EPS)
    t = (conv_bias - rmean) * s + beta
    return s, t


# ----------------------------- model ------------------------------

def init_params(key, i=4, o=64, ks=5):
    keys = iter(jax.random.split(key, 16))

    def conv_init(cout, cin, kh, kw):
        std = (2.0 / (cin * kh * kw)) ** 0.5
        w = std * jax.random.normal(next(keys), (cout, cin, kh, kw), jnp.float32)
        b = 0.05 * jax.random.normal(next(keys), (cout,), jnp.float32)
        return w, b

    def bn_init(c):
        k1, k2, k3, k4 = jax.random.split(next(keys), 4)
        return dict(gamma=1.0 + 0.1 * jax.random.normal(k1, (c,), jnp.float32),
                    beta=0.1 * jax.random.normal(k2, (c,), jnp.float32),
                    rmean=0.1 * jax.random.normal(k3, (c,), jnp.float32),
                    rvar=1.0 + 0.5 * jax.random.uniform(k4, (c,), jnp.float32))

    return dict(down=conv_init(o, i, ks, ks), bn_down=bn_init(o),
                conv1=conv_init(o, i, ks, ks), bn1=bn_init(o),
                conv2=conv_init(o, o, 1, 1), bn2=bn_init(o),
                conv3=conv_init(o, o, 3, 3), bn3=bn_init(o))


@jax.jit
def exact_conv_forward(x_nchw, params):
    """Eval-mode ExactConv forward (up=False, ks=5, std=2, bn=True, nested=True).
    x: (N, Cin, H, W) f32 -> (N, Cout, H//2, W//2) f32."""
    # TODO(synk): Dropout(p=0.05) ahead of conv1 is identity in eval mode.
    n = x_nchw.shape[0]
    o = params["down"][0].shape[0]
    x = jnp.transpose(x_nchw, (0, 2, 3, 1)).astype(jnp.bfloat16)       # NCHW -> NHWC, bf16

    # One shared im2col for both 5x5/stride-2 convs, K zero-padded (25*Cin=100 -> 128).
    k_pad = _round_up(25 * x.shape[-1], 128)
    patches, (_, oh, ow) = _im2col(x, 5, 5, stride=2, pad=2, k_pad=k_pad)

    wd, bd = params["down"];  sd, td = _bn_fold(bd, **params["bn_down"])
    w1, b1 = params["conv1"]; s1, t1 = _bn_fold(b1, **params["bn1"])
    w2, b2 = params["conv2"]; s2, t2 = _bn_fold(b2, **params["bn2"])

    wa = jnp.concatenate([_w_as_matrix(wd), _w_as_matrix(w1)], axis=1)  # (25*Cin, 2*o)
    wa = jnp.pad(wa, ((0, k_pad - wa.shape[0]), (0, 0)))                # K -> 128
    sa = jnp.concatenate([sd, s1]); ta = jnp.concatenate([td, t1])

    # Block-diagonal [[I, 0], [0, W2]]: identity lanes pass through the fused 1x1 matmul.
    w2m = w2[:, :, 0, 0].T                                              # (o, o), K x N
    eye = jnp.eye(o, dtype=jnp.float32)
    zer = jnp.zeros((o, o), jnp.float32)
    w2b = jnp.concatenate([jnp.concatenate([eye, zer], axis=1),
                           jnp.concatenate([zer, w2m], axis=1)], axis=0)
    s2b = jnp.concatenate([jnp.ones((o,), jnp.float32), s2])
    t2b = jnp.concatenate([jnp.zeros((o,), jnp.float32), t2])

    # Kernel 1: [identity | h2] in one lane-dense bf16 block (downsample + conv1 + conv2).
    comb = pallas_fused_block(patches, wa, sa, ta, w2b, s2b, t2b, no=o)  # (M, 2*o) bf16
    comb = comb.reshape(n, oh, ow, 2 * o)
    comb_p = jnp.pad(comb, ((0, 0), (1, 1), (1, 1), (0, 0)))             # 3x3 spatial halo

    # Kernel 2: direct 3x3 conv (in-VMEM im2col, single K=9*o matmul) + BN + ReLU + residual.
    w3, b3 = params["conv3"]; s3, t3 = _bn_fold(b3, **params["bn3"])
    w3m = jnp.transpose(w3, (2, 3, 1, 0)).reshape(9 * o, o)              # tap-major rows
    out = pallas_conv3x3_residual(comb_p, w3m, s3, t3, oh=oh, ow=ow, cin=o, cres=o)
    out = out.reshape(n, oh, ow, o)
    return jnp.transpose(out, (0, 3, 1, 2))                              # back to NCHW


def _reference_forward(x, params):
    """Pure-JAX f32 reference (eval-mode semantics of the PyTorch module)."""
    def conv(h, w, b, stride, pad):
        y = jax.lax.conv_general_dilated(
            h, w, (stride, stride), ((pad, pad), (pad, pad)),
            dimension_numbers=("NCHW", "OIHW", "NCHW"))
        return y + b[None, :, None, None]

    def bn(h, p):
        s = p["gamma"] / jnp.sqrt(p["rvar"] + BN_EPS)
        return (h - p["rmean"][None, :, None, None]) * s[None, :, None, None] \
               + p["beta"][None, :, None, None]

    wd, bd = params["down"]
    identity = bn(conv(x, wd, bd, 2, 2), params["bn_down"])
    w1, b1 = params["conv1"]
    h = jax.nn.relu(bn(conv(x, w1, b1, 2, 2), params["bn1"]))
    w2, b2 = params["conv2"]
    h = jax.nn.relu(bn(conv(h, w2, b2, 1, 0), params["bn2"]))
    w3, b3 = params["conv3"]
    h = jax.nn.relu(bn(conv(h, w3, b3, 1, 1), params["bn3"]))
    return h + identity


if __name__ == "__main__":
    key = jax.random.PRNGKey(0)
    kx, kp = jax.random.split(key)
    x = jax.random.normal(kx, (2, 4, 16, 16), jnp.float32)   # NCHW, like PyTorch
    params = init_params(kp, i=4, o=64, ks=5)

    out = jax.block_until_ready(exact_conv_forward(x, params))
    assert out.shape == (2, 64, 8, 8), out.shape
    assert bool(jnp.all(jnp.isfinite(out)))

    # fidelity check vs. f32 reference (bf16 MXU operands + bf16 intermediate stream
    # => small drift expected; tightened from the previous 10% bound)
    ref = _reference_forward(x, params)
    err = float(jnp.max(jnp.abs(out - ref)))
    scale = float(jnp.max(jnp.abs(ref)))
    assert err <= 0.05 * scale + 1e-2, (err, scale)

    print("KERNEL_OK")
</pallas_src>

<mosaic_0001>
module attributes {stable_mosaic.version = 11 : i64} {
  func.func @_fused_block_kernel(%arg0: i32, %arg1: memref<128x128xbf16, #tpu.memory_space<vmem>>, %arg2: memref<128x128xbf16, #tpu.memory_space<vmem>>, %arg3: memref<1x128xf32, #tpu.memory_space<vmem>>, %arg4: memref<1x128xf32, #tpu.memory_space<vmem>>, %arg5: memref<128x128xbf16, #tpu.memory_space<vmem>>, %arg6: memref<1x128xf32, #tpu.memory_space<vmem>>, %arg7: memref<1x128xf32, #tpu.memory_space<vmem>>, %arg8: memref<128x128xbf16, #tpu.memory_space<vmem>>) attributes {dimension_semantics = [#tpu.dimension_semantics<parallel>], iteration_bounds = array<i64: 1>, scalar_prefetch = 0 : i64, scratch_operands = 0 : i64, tpu.core_type = #tpu.core_type<tc>, window_params = [{transform_indices = @transform_0, window_bounds = array<i64: 128, 128>}, {pipeline_mode = #tpu.pipeline_mode<synchronous>, transform_indices = @transform_1, window_bounds = array<i64: 128, 128>}, {pipeline_mode = #tpu.pipeline_mode<synchronous>, transform_indices = @transform_2, window_bounds = array<i64: 1, 128>}, {pipeline_mode = #tpu.pipeline_mode<synchronous>, transform_indices = @transform_3, window_bounds = array<i64: 1, 128>}, {pipeline_mode = #tpu.pipeline_mode<synchronous>, transform_indices = @transform_4, window_bounds = array<i64: 128, 128>}, {pipeline_mode = #tpu.pipeline_mode<synchronous>, transform_indices = @transform_5, window_bounds = array<i64: 1, 128>}, {pipeline_mode = #tpu.pipeline_mode<synchronous>, transform_indices = @transform_6, window_bounds = array<i64: 1, 128>}, {transform_indices = @transform_7, window_bounds = array<i64: 128, 128>}]} {
    %c0 = arith.constant 0 : index
    %c0_0 = arith.constant 0 : index
    %0 = vector.load %arg1[%c0, %c0_0] : memref<128x128xbf16, #tpu.memory_space<vmem>>, vector<128x128xbf16>
    %c0_1 = arith.constant 0 : index
    %c0_2 = arith.constant 0 : index
    %1 = vector.load %arg2[%c0_1, %c0_2] : memref<128x128xbf16, #tpu.memory_space<vmem>>, vector<128x128xbf16>
    %cst = arith.constant dense<0.000000e+00> : vector<128x128xf32>
    %2 = tpu.matmul %0, %1, %cst {dimension_numbers = #tpu.dot_dimension_numbers<[1], [0], [0], [1], [0, 0, 1, 1], [], []>} : vector<128x128xbf16>, vector<128x128xbf16>, vector<128x128xf32> -> vector<128x128xf32>
    %c0_3 = arith.constant 0 : index
    %c0_4 = arith.constant 0 : index
    %3 = vector.load %arg3[%c0_3, %c0_4] : memref<1x128xf32, #tpu.memory_space<vmem>>, vector<1x128xf32>
    %4 = vector.broadcast %3 : vector<1x128xf32> to vector<128x128xf32>
    %5 = arith.mulf %2, %4 : vector<128x128xf32>
    %c0_5 = arith.constant 0 : index
    %c0_6 = arith.constant 0 : index
    %6 = vector.load %arg4[%c0_5, %c0_6] : memref<1x128xf32, #tpu.memory_space<vmem>>, vector<1x128xf32>
    %7 = vector.broadcast %6 : vector<1x128xf32> to vector<128x128xf32>
    %8 = arith.addf %5, %7 : vector<128x128xf32>
    %9 = tpu.iota {dimensions = array<i32: 1>} : vector<128x128xi32>
    %c64_i32 = arith.constant 64 : i32
    %10 = vector.broadcast %c64_i32 : i32 to vector<128x128xi32>
    %11 = arith.cmpi sge, %9, %10 : vector<128x128xi32>
    %cst_7 = arith.constant 0.000000e+00 : f32
    %12 = vector.broadcast %cst_7 : f32 to vector<128x128xf32>
    %13 = arith.maximumf %8, %12 : vector<128x128xf32>
    %14 = arith.select %11, %13, %8 : vector<128x128xi1>, vector<128x128xf32>
    %15 = arith.truncf %14 : vector<128x128xf32> to vector<128x128xbf16>
    %c0_8 = arith.constant 0 : index
    %c0_9 = arith.constant 0 : index
    %16 = vector.load %arg5[%c0_8, %c0_9] : memref<128x128xbf16, #tpu.memory_space<vmem>>, vector<128x128xbf16>
    %cst_10 = arith.constant dense<0.000000e+00> : vector<128x128xf32>
    %17 = tpu.matmul %15, %16, %cst_10 {dimension_numbers = #tpu.dot_dimension_numbers<[1], [0], [0], [1], [0, 0, 1, 1], [], []>} : vector<128x128xbf16>, vector<128x128xbf16>, vector<128x128xf32> -> vector<128x128xf32>
    %c0_11 = arith.constant 0 : index
    %c0_12 = arith.constant 0 : index
    %18 = vector.load %arg6[%c0_11, %c0_12] : memref<1x128xf32, #tpu.memory_space<vmem>>, vector<1x128xf32>
    %19 = vector.broadcast %18 : vector<1x128xf32> to vector<128x128xf32>
    %20 = arith.mulf %17, %19 : vector<128x128xf32>
    %c0_13 = arith.constant 0 : index
    %c0_14 = arith.constant 0 : index
    %21 = vector.load %arg7[%c0_13, %c0_14] : memref<1x128xf32, #tpu.memory_space<vmem>>, vector<1x128xf32>
    %22 = vector.broadcast %21 : vector<1x128xf32> to vector<128x128xf32>
    %23 = arith.addf %20, %22 : vector<128x128xf32>
    %cst_15 = arith.constant 0.000000e+00 : f32
    %24 = vector.broadcast %cst_15 : f32 to vector<128x128xf32>
    %25 = arith.maximumf %23, %24 : vector<128x128xf32>
    %26 = arith.select %11, %25, %23 : vector<128x128xi1>, vector<128x128xf32>
    %27 = arith.truncf %26 : vector<128x128xf32> to vector<128x128xbf16>
    %c0_16 = arith.constant 0 : index
    %c0_17 = arith.constant 0 : index
    %28 = vector.load %arg8[%c0_16, %c0_17] : memref<128x128xbf16, #tpu.memory_space<vmem>>, vector<128x128xbf16>
    tpu.vector_store %arg8[%c0_16, %c0_17], %27 {strides = array<i32>} : memref<128x128xbf16, #tpu.memory_space<vmem>>, vector<128x128xbf16>,
    return
  }
  func.func @transform_0(%arg0: i32) -> (i32, i32) {
    %c0_i32 = arith.constant 0 : i32
    %c0_i32_0 = arith.constant 0 : i32
    return %arg0, %c0_i32 : i32, i32
  }
  func.func @transform_1(%arg0: i32) -> (i32, i32) {
    %c0_i32 = arith.constant 0 : i32
    %c0_i32_0 = arith.constant 0 : i32
    %c0_i32_1 = arith.constant 0 : i32
    return %c0_i32, %c0_i32_0 : i32, i32
  }
  func.func @transform_2(%arg0: i32) -> (i32, i32) {
    %c0_i32 = arith.constant 0 : i32
    %c0_i32_0 = arith.constant 0 : i32
    %c0_i32_1 = arith.constant 0 : i32
    return %c0_i32, %c0_i32_0 : i32, i32
  }
  func.func @transform_3(%arg0: i32) -> (i32, i32) {
    %c0_i32 = arith.constant 0 : i32
    %c0_i32_0 = arith.constant 0 : i32
    %c0_i32_1 = arith.constant 0 : i32
    return %c0_i32, %c0_i32_0 : i32, i32
  }
  func.func @transform_4(%arg0: i32) -> (i32, i32) {
    %c0_i32 = arith.constant 0 : i32
    %c0_i32_0 = arith.constant 0 : i32
    %c0_i32_1 = arith.constant 0 : i32
    return %c0_i32, %c0_i32_0 : i32, i32
  }
  func.func @transform_5(%arg0: i32) -> (i32, i32) {
    %c0_i32 = arith.constant 0 : i32
    %c0_i32_0 = arith.constant 0 : i32
    %c0_i32_1 = arith.constant 0 : i32
    return %c0_i32, %c0_i32_0 : i32, i32
  }
  func.func @transform_6(%arg0: i32) -> (i32, i32) {
    %c0_i32 = arith.constant 0 : i32
    %c0_i32_0 = arith.constant 0 : i32
    %c0_i32_1 = arith.constant 0 : i32
    return %c0_i32, %c0_i32_0 : i32, i32
  }
  func.func @transform_7(%arg0: i32) -> (i32, i32) {
    %c0_i32 = arith.constant 0 : i32
    %c0_i32_0 = arith.constant 0 : i32
    return %arg0, %c0_i32 : i32, i32
  }
}

module attributes {stable_mosaic.version = 11 : i64} {
  func.func @_conv3x3_res_kernel(%arg0: i32, %arg1: memref<1x10x10x128xbf16, #tpu.memory_space<vmem>>, %arg2: memref<576x64xbf16, #tpu.memory_space<vmem>>, %arg3: memref<1x64xf32, #tpu.memory_space<vmem>>, %arg4: memref<1x64xf32, #tpu.memory_space<vmem>>, %arg5: memref<1x64x64xf32, #tpu.memory_space<vmem>>, %arg6: memref<64x576xbf16, #tpu.memory_space<vmem>>) attributes {dimension_semantics = [#tpu.dimension_semantics<parallel>], iteration_bounds = array<i64: 2>, scalar_prefetch = 0 : i64, scratch_operands = 1 : i64, tpu.core_type = #tpu.core_type<tc>, window_params = [{transform_indices = @transform_0, window_bounds = array<i64: 1, 10, 10, 128>}, {pipeline_mode = #tpu.pipeline_mode<synchronous>, transform_indices = @transform_1, window_bounds = array<i64: 576, 64>}, {pipeline_mode = #tpu.pipeline_mode<synchronous>, transform_indices = @transform_2, window_bounds = array<i64: 1, 64>}, {pipeline_mode = #tpu.pipeline_mode<synchronous>, transform_indices = @transform_3, window_bounds = array<i64: 1, 64>}, {transform_indices = @transform_4, window_bounds = array<i64: 1, 64, 64>}]} {
    %c0 = arith.constant 0 : index
    %c0_0 = arith.constant 0 : index
    %c0_1 = arith.constant 0 : index
    %c0_2 = arith.constant 0 : index
    %0 = vector.load %arg1[%c0, %c0_0, %c0_1, %c0_2] : memref<1x10x10x128xbf16, #tpu.memory_space<vmem>>, vector<1x10x10x128xbf16>
    %1 = vector.shape_cast %0 : vector<1x10x10x128xbf16> to vector<10x10x128xbf16>
    %2 = vector.extract_strided_slice %1 {offsets = [0, 0, 64], sizes = [8, 8, 64], strides = [1, 1, 1]} : vector<10x10x128xbf16> to vector<8x8x64xbf16>
    %3 = vector.shape_cast %2 : vector<8x8x64xbf16> to vector<64x64xbf16>
    %c0_3 = arith.constant 0 : index
    %c0_4 = arith.constant 0 : index
    %4 = vector.load %arg6[%c0_3, %c0_4] : memref<64x576xbf16, #tpu.memory_space<vmem>>, vector<64x64xbf16>
    tpu.vector_store %arg6[%c0_3, %c0_4], %3 {strides = array<i32>} : memref<64x576xbf16, #tpu.memory_space<vmem>>, vector<64x64xbf16>,
    %5 = vector.extract_strided_slice %1 {offsets = [0, 1, 64], sizes = [8, 8, 64], strides = [1, 1, 1]} : vector<10x10x128xbf16> to vector<8x8x64xbf16>
    %6 = vector.shape_cast %5 : vector<8x8x64xbf16> to vector<64x64xbf16>
    %c0_5 = arith.constant 0 : index
    %c64 = arith.constant 64 : index
    %7 = vector.load %arg6[%c0_5, %c64] : memref<64x576xbf16, #tpu.memory_space<vmem>>, vector<64x64xbf16>
    tpu.vector_store %arg6[%c0_5, %c64], %6 {strides = array<i32>} : memref<64x576xbf16, #tpu.memory_space<vmem>>, vector<64x64xbf16>,
    %8 = vector.extract_strided_slice %1 {offsets = [0, 2, 64], sizes = [8, 8, 64], strides = [1, 1, 1]} : vector<10x10x128xbf16> to vector<8x8x64xbf16>
    %9 = vector.shape_cast %8 : vector<8x8x64xbf16> to vector<64x64xbf16>
    %c0_6 = arith.constant 0 : index
    %c128 = arith.constant 128 : index
    %10 = vector.load %arg6[%c0_6, %c128] : memref<64x576xbf16, #tpu.memory_space<vmem>>, vector<64x64xbf16>
    tpu.vector_store %arg6[%c0_6, %c128], %9 {strides = array<i32>} : memref<64x576xbf16, #tpu.memory_space<vmem>>, vector<64x64xbf16>,
    %11 = vector.extract_strided_slice %1 {offsets = [1, 0, 64], sizes = [8, 8, 64], strides = [1, 1, 1]} : vector<10x10x128xbf16> to vector<8x8x64xbf16>
    %12 = vector.shape_cast %11 : vector<8x8x64xbf16> to vector<64x64xbf16>
    %c0_7 = arith.constant 0 : index
    %c192 = arith.constant 192 : index
    %13 = vector.load %arg6[%c0_7, %c192] : memref<64x576xbf16, #tpu.memory_space<vmem>>, vector<64x64xbf16>
    tpu.vector_store %arg6[%c0_7, %c192], %12 {strides = array<i32>} : memref<64x576xbf16, #tpu.memory_space<vmem>>, vector<64x64xbf16>,
    %14 = vector.extract_strided_slice %1 {offsets = [1, 1, 64], sizes = [8, 8, 64], strides = [1, 1, 1]} : vector<10x10x128xbf16> to vector<8x8x64xbf16>
    %15 = vector.shape_cast %14 : vector<8x8x64xbf16> to vector<64x64xbf16>
    %c0_8 = arith.constant 0 : index
    %c256 = arith.constant 256 : index
    %16 = vector.load %arg6[%c0_8, %c256] : memref<64x576xbf16, #tpu.memory_space<vmem>>, vector<64x64xbf16>
    tpu.vector_store %arg6[%c0_8, %c256], %15 {strides = array<i32>} : memref<64x576xbf16, #tpu.memory_space<vmem>>, vector<64x64xbf16>,
    %17 = vector.extract_strided_slice %1 {offsets = [1, 2, 64], sizes = [8, 8, 64], strides = [1, 1, 1]} : vector<10x10x128xbf16> to vector<8x8x64xbf16>
    %18 = vector.shape_cast %17 : vector<8x8x64xbf16> to vector<64x64xbf16>
    %c0_9 = arith.constant 0 : index
    %c320 = arith.constant 320 : index
    %19 = vector.load %arg6[%c0_9, %c320] : memref<64x576xbf16, #tpu.memory_space<vmem>>, vector<64x64xbf16>
    tpu.vector_store %arg6[%c0_9, %c320], %18 {strides = array<i32>} : memref<64x576xbf16, #tpu.memory_space<vmem>>, vector<64x64xbf16>,
    %20 = vector.extract_strided_slice %1 {offsets = [2, 0, 64], sizes = [8, 8, 64], strides = [1, 1, 1]} : vector<10x10x128xbf16> to vector<8x8x64xbf16>
    %21 = vector.shape_cast %20 : vector<8x8x64xbf16> to vector<64x64xbf16>
    %c0_10 = arith.constant 0 : index
    %c384 = arith.constant 384 : index
    %22 = vector.load %arg6[%c0_10, %c384] : memref<64x576xbf16, #tpu.memory_space<vmem>>, vector<64x64xbf16>
    tpu.vector_store %arg6[%c0_10, %c384], %21 {strides = array<i32>} : memref<64x576xbf16, #tpu.memory_space<vmem>>, vector<64x64xbf16>,
    %23 = vector.extract_strided_slice %1 {offsets = [2, 1, 64], sizes = [8, 8, 64], strides = [1, 1, 1]} : vector<10x10x128xbf16> to vector<8x8x64xbf16>
    %24 = vector.shape_cast %23 : vector<8x8x64xbf16> to vector<64x64xbf16>
    %c0_11 = arith.constant 0 : index
    %c448 = arith.constant 448 : index
    %25 = vector.load %arg6[%c0_11, %c448] : memref<64x576xbf16, #tpu.memory_space<vmem>>, vector<64x64xbf16>
    tpu.vector_store %arg6[%c0_11, %c448], %24 {strides = array<i32>} : memref<64x576xbf16, #tpu.memory_space<vmem>>, vector<64x64xbf16>,
    %26 = vector.extract_strided_slice %1 {offsets = [2, 2, 64], sizes = [8, 8, 64], strides = [1, 1, 1]} : vector<10x10x128xbf16> to vector<8x8x64xbf16>
    %27 = vector.shape_cast %26 : vector<8x8x64xbf16> to vector<64x64xbf16>
    %c0_12 = arith.constant 0 : index
    %c512 = arith.constant 512 : index
    %28 = vector.load %arg6[%c0_12, %c512] : memref<64x576xbf16, #tpu.memory_space<vmem>>, vector<64x64xbf16>
    tpu.vector_store %arg6[%c0_12, %c512], %27 {strides = array<i32>} : memref<64x576xbf16, #tpu.memory_space<vmem>>, vector<64x64xbf16>,
    %c0_13 = arith.constant 0 : index
    %c0_14 = arith.constant 0 : index
    %29 = vector.load %arg6[%c0_13, %c0_14] : memref<64x576xbf16, #tpu.memory_space<vmem>>, vector<64x576xbf16>
    %c0_15 = arith.constant 0 : index
    %c0_16 = arith.constant 0 : index
    %30 = vector.load %arg2[%c0_15, %c0_16] : memref<576x64xbf16, #tpu.memory_space<vmem>>, vector<576x64xbf16>
    %cst = arith.constant dense<0.000000e+00> : vector<64x64xf32>
    %31 = tpu.matmul %29, %30, %cst {dimension_numbers = #tpu.dot_dimension_numbers<[1], [0], [0], [1], [0, 0, 1, 1], [], []>} : vector<64x576xbf16>, vector<576x64xbf16>, vector<64x64xf32> -> vector<64x64xf32>
    %c0_17 = arith.constant 0 : index
    %c0_18 = arith.constant 0 : index
    %32 = vector.load %arg3[%c0_17, %c0_18] : memref<1x64xf32, #tpu.memory_space<vmem>>, vector<1x64xf32>
    %33 = vector.broadcast %32 : vector<1x64xf32> to vector<64x64xf32>
    %34 = arith.mulf %31, %33 : vector<64x64xf32>
    %c0_19 = arith.constant 0 : index
    %c0_20 = arith.constant 0 : index
    %35 = vector.load %arg4[%c0_19, %c0_20] : memref<1x64xf32, #tpu.memory_space<vmem>>, vector<1x64xf32>
    %36 = vector.broadcast %35 : vector<1x64xf32> to vector<64x64xf32>
    %37 = arith.addf %34, %36 : vector<64x64xf32>
    %cst_21 = arith.constant 0.000000e+00 : f32
    %38 = vector.broadcast %cst_21 : f32 to vector<64x64xf32>
    %39 = arith.maximumf %37, %38 : vector<64x64xf32>
    %40 = vector.extract_strided_slice %1 {offsets = [1, 1, 0], sizes = [8, 8, 64], strides = [1, 1, 1]} : vector<10x10x128xbf16> to vector<8x8x64xbf16>
    %41 = arith.extf %40 : vector<8x8x64xbf16> to vector<8x8x64xf32>
    %42 = vector.shape_cast %41 : vector<8x8x64xf32> to vector<64x64xf32>
    %43 = arith.addf %39, %42 : vector<64x64xf32>
    %c0_22 = arith.constant 0 : index
    %c0_23 = arith.constant 0 : index
    %c0_24 = arith.constant 0 : index
    %44 = vector.load %arg5[%c0_22, %c0_23, %c0_24] : memref<1x64x64xf32, #tpu.memory_space<vmem>>, vector<1x64x64xf32>
    %45 = vector.shape_cast %44 : vector<1x64x64xf32> to vector<64x64xf32>
    %46 = vector.shape_cast %43 : vector<64x64xf32> to vector<1x64x64xf32>
    tpu.vector_store %arg5[%c0_22, %c0_23, %c0_24], %46 {strides = array<i32>} : memref<1x64x64xf32, #tpu.memory_space<vmem>>, vector<1x64x64xf32>,
    return
  }
  func.func @transform_0(%arg0: i32) -> (i32, i32, i32, i32) {
    %c0_i32 = arith.constant 0 : i32
    %c0_i32_0 = arith.constant 0 : i32
    %c0_i32_1 = arith.constant 0 : i32
    %c0_i32_2 = arith.constant 0 : i32
    return %arg0, %c0_i32, %c0_i32_0, %c0_i32_1 : i32, i32, i32, i32
  }
  func.func @transform_1(%arg0: i32) -> (i32, i32) {
    %c0_i32 = arith.constant 0 : i32
    %c0_i32_0 = arith.constant 0 : i32
    %c0_i32_1 = arith.constant 0 : i32
    return %c0_i32, %c0_i32_0 : i32, i32
  }
  func.func @transform_2(%arg0: i32) -> (i32, i32) {
    %c0_i32 = arith.constant 0 : i32
    %c0_i32_0 = arith.constant 0 : i32
    %c0_i32_1 = arith.constant 0 : i32
    return %c0_i32, %c0_i32_0 : i32, i32
  }
  func.func @transform_3(%arg0: i32) -> (i32, i32) {
    %c0_i32 = arith.constant 0 : i32
    %c0_i32_0 = arith.constant 0 : i32
    %c0_i32_1 = arith.constant 0 : i32
    return %c0_i32, %c0_i32_0 : i32, i32
  }
  func.func @transform_4(%arg0: i32) -> (i32, i32, i32) {
    %c0_i32 = arith.constant 0 : i32
    %c0_i32_0 = arith.constant 0 : i32
    %c0_i32_1 = arith.constant 0 : i32
    return %arg0, %c0_i32, %c0_i32_0 : i32, i32, i32
  }
}

</mosaic_0001>

<bundles_post_ra>
// kernel: exact_conv_forward.2
= control target key start
LH: loop header
LB: loop body
LE: loop exit
PB: predicated region body
PF: predicated region fallthrough
CT: control target
= control target key end

     0   :  { %v243_v28 = vlaneseq  ;;  %s981_s1 = inlined_call_operand.vmem [shape: bf16[128,128], index: 1, kind: input, shape index: {}]   ;;  %s982_s2 = inlined_call_operand.vmem [shape: f32[1,128], index: 2, kind: input, shape index: {}]   ;;  %s983_s3 = inlined_call_operand.vmem [shape: f32[1,128], index: 3, kind: input, shape index: {}]   ;;  %s984_s0 = inlined_call_operand.vmem [shape: bf16[128,128], index: 0, kind: input, shape index: {}]   ;;  %s985_s4 = inlined_call_operand.vmem [shape: bf16[128,128], index: 4, kind: input, shape index: {}]   ;;  %s986_s5 = inlined_call_operand.vmem [shape: f32[1,128], index: 5, kind: input, shape index: {}]   ;;  %s987_s6 = inlined_call_operand.vmem [shape: f32[1,128], index: 6, kind: input, shape index: {}]   ;;  %s988_s7 = inlined_call_operand.vmem [shape: bf16[128,128], index: 7, kind: output, shape index: {}]  }
   0x1   :  { %v618_v0 = vld [vmem:[%s981_s1 + $0x38] sm:$0xff]  ;;  %v617_v1 = vld [vmem:[%s981_s1 + $0x30] sm:$0xff]  ;;  %v616_v2 = vld [vmem:[%s981_s1 + $0x28] sm:$0xff] }
   0x2   :  { %154 = vmatpush.bf16.msra.mxu0 %v618_v0  ;;  %674 = vmatpush.bf16.msra.mxu2 %v618_v0  ;;  %v615_v3 = vld [vmem:[%s981_s1 + $0x20] sm:$0xff]  ;;  %v614_v4 = vld [vmem:[%s981_s1 + $0x18] sm:$0xff]  ;;  %v613_v5 = vld [vmem:[%s981_s1 + $0x10] sm:$0xff]  ;;  %v818_v32 = vand.u32 127, %v243_v28 }
   0x3   :  { %v612_v6 = vld [vmem:[%s981_s1 + $0x8] sm:$0xff]  ;;  %v611_v7 = vld [vmem:[%s981_s1] sm:$0xff]  ;;  %v626_v12 = vld [vmem:[%s985_s4 + $0x38] sm:$0xff] }
   0x4   :  { %v603_v8 = vld [vmem:[%s984_s0] sm:$0xff]  ;;  %v604_v10 = vld [vmem:[%s984_s0 + $0x8] sm:$0xff]  ;;  %350 = vmatpush.bf16.msra.mxu1 %v626_v12  ;;  %v625_v13 = vld [vmem:[%s985_s4 + $0x30] sm:$0xff]  ;;  %682 = vmatpush.bf16.msra.mxu3 %v626_v12  ;;  %vm245_vm0 = vcmp.ge.s32.totalorder %v818_v32, 64 }
   0x5   :  { %v607_v9 = vld [vmem:[%s984_s0 + $0x20] sm:$0xff]  ;;  %v608_v11 = vld [vmem:[%s984_s0 + $0x28] sm:$0xff]  ;;  %v605_v16 = vld [vmem:[%s984_s0 + $0x10] sm:$0xff] }
   0x6   :  { %155 = vmatpush.bf16.msra.mxu0 %v617_v1  ;;  %675 = vmatpush.bf16.msra.mxu2 %v617_v1  ;;  %v624_v14 = vld [vmem:[%s985_s4 + $0x28] sm:$0xff]  ;;  %v623_v15 = vld [vmem:[%s985_s4 + $0x20] sm:$0xff]  ;;  %v609_v17 = vld [vmem:[%s984_s0 + $0x30] sm:$0xff] }
   0x7   :  { %v606_v18 = vld [vmem:[%s984_s0 + $0x18] sm:$0xff]  ;;  %v621_v21 = vld [vmem:[%s985_s4 + $0x10] sm:$0xff]  ;;  %v620_v22 = vld [vmem:[%s985_s4 + $0x8] sm:$0xff] }
   0x8   :  { %351 = vmatpush.bf16.msra.mxu1 %v625_v13  ;;  %683 = vmatpush.bf16.msra.mxu3 %v625_v13  ;;  %v610_v19 = vld [vmem:[%s984_s0 + $0x38] sm:$0xff]  ;;  %v619_v23 = vld [vmem:[%s985_s4] sm:$0xff] }
   0x9   :  { %v622_v20 = vld [vmem:[%s985_s4 + $0x18] sm:$0xff]  ;;  %v809_v24 = vld [vmem:[%s982_s2] ss:$0 sm:$0xff] }
   0xa   :  { %156 = vmatpush.bf16.msra.mxu0 %v616_v2  ;;  %676 = vmatpush.bf16.msra.mxu2 %v616_v2  ;;  %v815_v27 = vld [vmem:[%s983_s3] ss:$0 sm:$0xff] }
   0xc   :  { %352 = vmatpush.bf16.msra.mxu1 %v624_v14  ;;  %684 = vmatpush.bf16.msra.mxu3 %v624_v14 }
   0xe   :  { %157 = vmatpush.bf16.msra.mxu0 %v615_v3  ;;  %677 = vmatpush.bf16.msra.mxu2 %v615_v3 }
  0x10   :  { %353 = vmatpush.bf16.msra.mxu1 %v623_v15  ;;  %685 = vmatpush.bf16.msra.mxu3 %v623_v15 }
  0x12   :  { %158 = vmatpush.bf16.msra.mxu0 %v614_v4  ;;  %678 = vmatpush.bf16.msra.mxu2 %v614_v4 }
  0x14   :  { %354 = vmatpush.bf16.msra.mxu1 %v622_v20  ;;  %686 = vmatpush.bf16.msra.mxu3 %v622_v20 }
  0x16   :  { %159 = vmatpush.bf16.msra.mxu0 %v613_v5  ;;  %679 = vmatpush.bf16.msra.mxu2 %v613_v5 }
  0x18   :  { %355 = vmatpush.bf16.msra.mxu1 %v621_v21  ;;  %687 = vmatpush.bf16.msra.mxu3 %v621_v21 }
  0x1a   :  { %160 = vmatpush.bf16.msra.mxu0 %v612_v6  ;;  %680 = vmatpush.bf16.msra.mxu2 %v612_v6 }
  0x1c   :  { %356 = vmatpush.bf16.msra.mxu1 %v620_v22  ;;  %688 = vmatpush.bf16.msra.mxu3 %v620_v22 }
  0x1e   :  { %161 = vmatpush.bf16.msra.mxu0 %v611_v7  ;;  %681 = vmatpush.bf16.msra.mxu2 %v611_v7 }
  0x20   :  { %357 = vmatpush.bf16.msra.mxu1 %v619_v23  ;;  %689 = vmatpush.bf16.msra.mxu3 %v619_v23 }
  0x21   :  { %162 = vmatmul.bf16.vlgmr.msra.gmra.mxu0 %v603_v8  ;;  %182 = vmatmul.bf16.vlgmr.msra.gmra.mxu2 %v607_v9 }
  0x31   :  { %167 = vmatmul.bf16.gmra.mxu0 %v604_v10  ;;  %187 = vmatmul.bf16.gmra.mxu2 %v608_v11 }
  0x41   :  { %172 = vmatmul.bf16.gmra.mxu0 %v605_v16  ;;  %192 = vmatmul.bf16.gmra.mxu2 %v609_v17 }
  0x51   :  { %177 = vmatmul.bf16.gmra.mxu0 %v606_v18  ;;  %197 = vmatmul.bf16.gmra.mxu2 %v610_v19 }
  0x9e   :  { %v163_v25 = vpop.f32.mrf.mxu0 }
  0x9f   :  { %v207_v26 = vmul.f32 %v809_v24, %v163_v25 }
  0xa1   :  { %v227_v29 = vadd.f32 %v815_v27, %v207_v26 }
  0xa3   :  { %v246_v33 = vmax.f32 %v227_v29, 0.0 }
  0xa4   :  { %v183_v30 = vpop.f32.mrf.mxu2 }
  0xa5   :  { %v215_v34 = vmul.f32 %v809_v24, %v183_v30  ;;  %v262_v39 = vsel %vm245_vm0, %v246_v33, %v227_v29 }
  0xa6   :  { %v165_v31 = vpop.f32.mrf.mxu0 }
  0xa7   :  { %v208_v35 = vmul.f32 %v809_v24, %v165_v31  ;;  %v235_v37 = vadd.f32 %v815_v27, %v215_v34 }
  0xa9   :  { %v228_v36 = vadd.f32 %v815_v27, %v208_v35  ;;  %v254_v45 = vmax.f32 %v235_v37, 0.0 }
  0xab   :  { %v247_v38 = vmax.f32 %v228_v36, 0.0  ;;  %v270_v50 = vsel %vm245_vm0, %v254_v45, %v235_v37 }
  0xac   :  { %v185_v40 = vpop.f32.mrf.mxu2 }
  0xad   :  { %v216_v41 = vmul.f32 %v809_v24, %v185_v40  ;;  %v263_v42 = vsel %vm245_vm0, %v247_v38, %v228_v36 }
  0xae   :  { %v168_v43 = vpop.f32.mrf.mxu0  ;;  %v278_v44 = vpack.c.bf16 %v263_v42, %v262_v39 }
  0xaf   :  { %v236_v46 = vadd.f32 %v815_v27, %v216_v41  ;;  %v209_v47 = vmul.f32 %v809_v24, %v168_v43 }
  0xb0   :  { %358 = vmatmul.bf16.vlgmr.msra.gmra.mxu1 %v278_v44 }
  0xb1   :  { %v255_v48 = vmax.f32 %v236_v46, 0.0  ;;  %v229_v49 = vadd.f32 %v815_v27, %v209_v47 }
  0xb3   :  { %v271_v51 = vsel %vm245_vm0, %v255_v48, %v236_v46  ;;  %v248_v55 = vmax.f32 %v229_v49, 0.0 }
  0xb4   :  { %v188_v52 = vpop.f32.mrf.mxu2  ;;  %v282_v53 = vpack.c.bf16 %v271_v51, %v270_v50 }
  0xb5   :  { %v217_v56 = vmul.f32 %v809_v24, %v188_v52  ;;  %v264_v61 = vsel %vm245_vm0, %v248_v55, %v229_v49 }
  0xb6   :  { %v170_v54 = vpop.f32.mrf.mxu0  ;;  %378 = vmatmul.bf16.vlgmr.msra.gmra.mxu3 %v282_v53 }
  0xb7   :  { %v210_v57 = vmul.f32 %v809_v24, %v170_v54  ;;  %v237_v59 = vadd.f32 %v815_v27, %v217_v56 }
  0xb9   :  { %v230_v58 = vadd.f32 %v815_v27, %v210_v57  ;;  %v256_v3 = vmax.f32 %v237_v59, 0.0 }
  0xbb   :  { %v249_v60 = vmax.f32 %v230_v58, 0.0  ;;  %v272_v8 = vsel %vm245_vm0, %v256_v3, %v237_v59 }
  0xbc   :  { %v190_v62 = vpop.f32.mrf.mxu2 }
  0xbd   :  { %v218_v63 = vmul.f32 %v809_v24, %v190_v62  ;;  %v265_v0 = vsel %vm245_vm0, %v249_v60, %v230_v58 }
  0xbe   :  { %v173_v1 = vpop.f32.mrf.mxu0  ;;  %v279_v2 = vpack.c.bf16 %v265_v0, %v264_v61 }
  0xbf   :  { %v238_v4 = vadd.f32 %v815_v27, %v218_v63  ;;  %v211_v5 = vmul.f32 %v809_v24, %v173_v1 }
  0xc0   :  { %363 = vmatmul.bf16.gmra.mxu1 %v279_v2 }
  0xc1   :  { %v257_v6 = vmax.f32 %v238_v4, 0.0  ;;  %v231_v7 = vadd.f32 %v815_v27, %v211_v5 }
  0xc3   :  { %v273_v9 = vsel %vm245_vm0, %v257_v6, %v238_v4  ;;  %v250_v13 = vmax.f32 %v231_v7, 0.0 }
  0xc4   :  { %v193_v10 = vpop.f32.mrf.mxu2  ;;  %v283_v11 = vpack.c.bf16 %v273_v9, %v272_v8 }
  0xc5   :  { %v219_v14 = vmul.f32 %v809_v24, %v193_v10  ;;  %v266_v19 = vsel %vm245_vm0, %v250_v13, %v231_v7 }
  0xc6   :  { %v175_v12 = vpop.f32.mrf.mxu0  ;;  %383 = vmatmul.bf16.gmra.mxu3 %v283_v11 }
  0xc7   :  { %v212_v15 = vmul.f32 %v809_v24, %v175_v12  ;;  %v239_v17 = vadd.f32 %v815_v27, %v219_v14 }
  0xc9   :  { %v232_v16 = vadd.f32 %v815_v27, %v212_v15  ;;  %v258_v26 = vmax.f32 %v239_v17, 0.0 }
  0xcb   :  { %v251_v18 = vmax.f32 %v232_v16, 0.0  ;;  %v274_v33 = vsel %vm245_vm0, %v258_v26, %v239_v17 }
  0xcc   :  { %v195_v20 = vpop.f32.mrf.mxu2 }
  0xcd   :  { %v220_v21 = vmul.f32 %v809_v24, %v195_v20  ;;  %v267_v22 = vsel %vm245_vm0, %v251_v18, %v232_v16 }
  0xce   :  { %v178_v23 = vpop.f32.mrf.mxu0  ;;  %v280_v25 = vpack.c.bf16 %v267_v22, %v266_v19 }
  0xcf   :  { %v240_v28 = vadd.f32 %v815_v27, %v220_v21  ;;  %v213_v29 = vmul.f32 %v809_v24, %v178_v23 }
  0xd0   :  { %368 = vmatmul.bf16.gmra.mxu1 %v280_v25 }
  0xd1   :  { %v259_v30 = vmax.f32 %v240_v28, 0.0  ;;  %v233_v31 = vadd.f32 %v815_v27, %v213_v29 }
  0xd3   :  { %v275_v34 = vsel %vm245_vm0, %v259_v30, %v240_v28  ;;  %v252_v38 = vmax.f32 %v233_v31, 0.0 }
  0xd4   :  { %v198_v35 = vpop.f32.mrf.mxu2  ;;  %v284_v36 = vpack.c.bf16 %v275_v34, %v274_v33 }
  0xd5   :  { %v221_v39 = vmul.f32 %v809_v24, %v198_v35  ;;  %v268_v44 = vsel %vm245_vm0, %v252_v38, %v233_v31 }
  0xd6   :  { %v180_v37 = vpop.f32.mrf.mxu0  ;;  %388 = vmatmul.bf16.gmra.mxu3 %v284_v36 }
  0xd7   :  { %v214_v40 = vmul.f32 %v809_v24, %v180_v37  ;;  %v241_v42 = vadd.f32 %v815_v27, %v221_v39 }
  0xd9   :  { %v234_v41 = vadd.f32 %v815_v27, %v214_v40  ;;  %v260_v49 = vmax.f32 %v241_v42, 0.0 }
  0xdb   :  { %v253_v43 = vmax.f32 %v234_v41, 0.0  ;;  %v276_v52 = vsel %vm245_vm0, %v260_v49, %v241_v42 }
  0xdc   :  { %v200_v45 = vpop.f32.mrf.mxu2 }
  0xdd   :  { %v222_v46 = vmul.f32 %v809_v24, %v200_v45  ;;  %v269_v47 = vsel %vm245_vm0, %v253_v43, %v234_v41  ;;  %v886_v24 = vld [vmem:[%s986_s5] ss:$0 sm:$0xff] }
  0xde   :  { %v281_v48 = vpack.c.bf16 %v269_v47, %v268_v44 }
  0xdf   :  { %v242_v50 = vadd.f32 %v815_v27, %v222_v46  ;;  %v892_v27 = vld [vmem:[%s987_s6] ss:$0 sm:$0xff] }
  0xe0   :  { %373 = vmatmul.bf16.gmra.mxu1 %v281_v48 }
  0xe1   :  { %v261_v51 = vmax.f32 %v242_v50, 0.0 }
  0xe3   :  { %v277_v53 = vsel %vm245_vm0, %v261_v51, %v242_v50 }
  0xe4   :  { %v285_v54 = vpack.c.bf16 %v277_v53, %v276_v52 }
  0xe6   :  { %393 = vmatmul.bf16.gmra.mxu3 %v285_v54 }
 0x12d   :  { %v359_v55 = vpop.f32.mrf.mxu1 }
 0x12e   :  { %v403_v56 = vmul.f32 %v886_v24, %v359_v55 }
 0x130   :  { %v423_v57 = vadd.f32 %v892_v27, %v403_v56 }
 0x132   :  { %v439_v60 = vmax.f32 %v423_v57, 0.0 }
 0x134   :  { %v455_v0 = vsel %vm245_vm0, %v439_v60, %v423_v57 }
 0x135   :  { %v361_v58 = vpop.f32.mrf.mxu1 }
 0x136   :  { %v404_v59 = vmul.f32 %v886_v24, %v361_v58 }
 0x138   :  { %v424_v61 = vadd.f32 %v892_v27, %v404_v59 }
 0x139   :  { %v379_v62 = vpop.f32.mrf.mxu3 }
 0x13a   :  { %v440_v63 = vmax.f32 %v424_v61, 0.0  ;;  %v411_v2 = vmul.f32 %v886_v24, %v379_v62 }
 0x13c   :  { %v456_v1 = vsel %vm245_vm0, %v440_v63, %v424_v61  ;;  %v431_v5 = vadd.f32 %v892_v27, %v411_v2 }
 0x13d   :  { %v630_v3 = vpack.c.bf16 %v456_v1, %v455_v0  ;;  %v364_v4 = vpop.f32.mrf.mxu1 }
 0x13e   :  { %v405_v6 = vmul.f32 %v886_v24, %v364_v4  ;;  %v447_v9 = vmax.f32 %v431_v5, 0.0 }
 0x13f   :  { %631 = vst [vmem:[%s988_s7] sm:$0xff] %v630_v3  }
 0x140   :  { %v425_v10 = vadd.f32 %v892_v27, %v405_v6  ;;  %v463_v15 = vsel %vm245_vm0, %v447_v9, %v431_v5 }
 0x141   :  { %v381_v7 = vpop.f32.mrf.mxu3 }
 0x142   :  { %v412_v8 = vmul.f32 %v886_v24, %v381_v7  ;;  %v441_v16 = vmax.f32 %v425_v10, 0.0 }
 0x144   :  { %v432_v11 = vadd.f32 %v892_v27, %v412_v8  ;;  %v457_v22 = vsel %vm245_vm0, %v441_v16, %v425_v10 }
 0x145   :  { %v366_v12 = vpop.f32.mrf.mxu1 }
 0x146   :  { %v448_v13 = vmax.f32 %v432_v11, 0.0  ;;  %v406_v14 = vmul.f32 %v886_v24, %v366_v12 }
 0x148   :  { %v464_v17 = vsel %vm245_vm0, %v448_v13, %v432_v11  ;;  %v426_v18 = vadd.f32 %v892_v27, %v406_v14 }
 0x149   :  { %v650_v19 = vpack.c.bf16 %v464_v17, %v463_v15  ;;  %v384_v20 = vpop.f32.mrf.mxu3 }
 0x14a   :  { %v442_v21 = vmax.f32 %v426_v18, 0.0  ;;  %v413_v25 = vmul.f32 %v886_v24, %v384_v20 }
 0x14b   :  { %670 = vst [vmem:[%s988_s7 + $0x20] sm:$0xff] %v650_v19  }
 0x14c   :  { %v458_v23 = vsel %vm245_vm0, %v442_v21, %v426_v18  ;;  %v433_v29 = vadd.f32 %v892_v27, %v413_v25 }
 0x14d   :  { %v635_v26 = vpack.c.bf16 %v458_v23, %v457_v22  ;;  %v369_v28 = vpop.f32.mrf.mxu1 }
 0x14e   :  { %v407_v30 = vmul.f32 %v886_v24, %v369_v28  ;;  %v449_v34 = vmax.f32 %v433_v29, 0.0 }
 0x14f   :  { %667 = vst [vmem:[%s988_s7 + $0x8] sm:$0xff] %v635_v26  }
 0x150   :  { %v427_v35 = vadd.f32 %v892_v27, %v407_v30  ;;  %v465_v40 = vsel %vm245_vm0, %v449_v34, %v433_v29 }
 0x151   :  { %v386_v31 = vpop.f32.mrf.mxu3 }
 0x152   :  { %v414_v33 = vmul.f32 %v886_v24, %v386_v31  ;;  %v443_v41 = vmax.f32 %v427_v35, 0.0 }
 0x154   :  { %v434_v36 = vadd.f32 %v892_v27, %v414_v33  ;;  %v459_v47 = vsel %vm245_vm0, %v443_v41, %v427_v35 }
 0x155   :  { %v371_v37 = vpop.f32.mrf.mxu1 }
 0x156   :  { %v450_v38 = vmax.f32 %v434_v36, 0.0  ;;  %v408_v39 = vmul.f32 %v886_v24, %v371_v37 }
 0x158   :  { %v466_v42 = vsel %vm245_vm0, %v450_v38, %v434_v36  ;;  %v428_v43 = vadd.f32 %v892_v27, %v408_v39 }
 0x159   :  { %v655_v44 = vpack.c.bf16 %v466_v42, %v465_v40  ;;  %v389_v45 = vpop.f32.mrf.mxu3 }
 0x15a   :  { %v444_v46 = vmax.f32 %v428_v43, 0.0  ;;  %v415_v49 = vmul.f32 %v886_v24, %v389_v45 }
 0x15b   :  { %671 = vst [vmem:[%s988_s7 + $0x28] sm:$0xff] %v655_v44  }
 0x15c   :  { %v460_v48 = vsel %vm245_vm0, %v444_v46, %v428_v43  ;;  %v435_v52 = vadd.f32 %v892_v27, %v415_v49 }
 0x15d   :  { %v640_v50 = vpack.c.bf16 %v460_v48, %v459_v47  ;;  %v374_v51 = vpop.f32.mrf.mxu1 }
 0x15e   :  { %v409_v53 = vmul.f32 %v886_v24, %v374_v51  ;;  %v451_v56 = vmax.f32 %v435_v52, 0.0 }
 0x15f   :  { %668 = vst [vmem:[%s988_s7 + $0x10] sm:$0xff] %v640_v50  }
 0x160   :  { %v429_v57 = vadd.f32 %v892_v27, %v409_v53  ;;  %v467_v62 = vsel %vm245_vm0, %v451_v56, %v435_v52 }
 0x161   :  { %v391_v54 = vpop.f32.mrf.mxu3 }
 0x162   :  { %v416_v55 = vmul.f32 %v886_v24, %v391_v54  ;;  %v445_v63 = vmax.f32 %v429_v57, 0.0 }
 0x164   :  { %v436_v58 = vadd.f32 %v892_v27, %v416_v55  ;;  %v461_v5 = vsel %vm245_vm0, %v445_v63, %v429_v57 }
 0x165   :  { %v376_v59 = vpop.f32.mrf.mxu1 }
 0x166   :  { %v452_v60 = vmax.f32 %v436_v58, 0.0  ;;  %v410_v61 = vmul.f32 %v886_v24, %v376_v59 }
 0x168   :  { %v468_v0 = vsel %vm245_vm0, %v452_v60, %v436_v58  ;;  %v430_v1 = vadd.f32 %v892_v27, %v410_v61 }
 0x169   :  { %v660_v2 = vpack.c.bf16 %v468_v0, %v467_v62  ;;  %v394_v3 = vpop.f32.mrf.mxu3 }
 0x16a   :  { %v446_v4 = vmax.f32 %v430_v1, 0.0  ;;  %v417_v7 = vmul.f32 %v886_v24, %v394_v3 }
 0x16b   :  { %672 = vst [vmem:[%s988_s7 + $0x30] sm:$0xff] %v660_v2  }
 0x16c   :  { %v462_v6 = vsel %vm245_vm0, %v446_v4, %v430_v1  ;;  %v437_v9 = vadd.f32 %v892_v27, %v417_v7 }
 0x16d   :  { %v645_v8 = vpack.c.bf16 %v462_v6, %v461_v5 }
 0x16e   :  { %v453_v12 = vmax.f32 %v437_v9, 0.0 }
 0x16f   :  { %669 = vst [vmem:[%s988_s7 + $0x18] sm:$0xff] %v645_v8  }
 0x170   :  { %v469_v15 = vsel %vm245_vm0, %v453_v12, %v437_v9 }
 0x171   :  { %v396_v10 = vpop.f32.mrf.mxu3 }
 0x172   :  { %v418_v11 = vmul.f32 %v886_v24, %v396_v10 }
 0x174   :  { %v438_v13 = vadd.f32 %v892_v27, %v418_v11 }
 0x176   :  { %v454_v14 = vmax.f32 %v438_v13, 0.0 }
 0x178   :  { %v470_v16 = vsel %vm245_vm0, %v454_v14, %v438_v13 }
 0x179   :  { %v665_v17 = vpack.c.bf16 %v470_v16, %v469_v15 }
 0x17b   :  { %673 = vst [vmem:[%s988_s7 + $0x38] sm:$0xff] %v665_v17  }

// kernel: exact_conv_forward.3
= control target key start
LH: loop header
LB: loop body
LE: loop exit
PB: predicated region body
PF: predicated region fallthrough
CT: control target
= control target key end

     0   :  { %9 = vsyncpa [#allocation4], 0  ;;  %s2466_s0 = inlined_call_operand.vmem [shape: bf16[2,10,10,128], index: 0, kind: input, shape index: {}]   ;;  %s2467_s1 = inlined_call_operand.vmem [shape: bf16[576,64], index: 1, kind: input, shape index: {}]   ;;  %s2468_s2 = inlined_call_operand.vmem [shape: f32[1,64], index: 2, kind: input, shape index: {}]   ;;  %s2469_s3 = inlined_call_operand.vmem [shape: f32[1,64], index: 3, kind: input, shape index: {}]   ;;  %s2470_s4 = inlined_call_operand.hbm [shape: f32[2,64,64], index: 4, kind: output, shape index: {}]  }
   0x1   :  { %11 = vsyncpa [#allocation4 + $0x1], 0  ;;  %s1819_s15 = smov 0   ;;  %s1821_s16 = smov 0  }
   0x2   :  { %s1823_s17 = smov 0   ;;  %s1825_s18 = smov 0  }
   0x3 LB: > { %s1840_s19 = sadd.s32 4294967295, %s1789_s18   ;;  %s1360_s20 = sadd.s32 4294967294, %s1789_s18   ;;  %s1789_s18 = sphi %s1825_s18, %s2480_s18   ;;  %s1785_s17 = sphi %s1823_s17, %s2479_s17   ;;  %s1781_s16 = sphi %s1821_s16, %s2478_s16   ;;  %s1777_s15 = sphi %s1819_s15, %s2477_s15  }
   0x4   : > { %s1844_s21 = sadd.s32 1, %s1789_s18   ;;  %s113_s22 = sadd.s32 1, %s1785_s17 }
   0x5   : > { %s110_s23 = ssub.s32 %s1789_s18, %s1844_s21  ;;  %p123_p0 = scmp.ne.s32.totalorder %s1785_s17, %s1781_s16 }
   0x6   : > { %p111_p1 = scmp.eq.s32.totalorder %s110_s23, 0  ;;  %p124_p2 = scmp.eq.s32.totalorder %s1840_s19, 1 }
   0x7   : > { %p129_p3 = scmp.ne.s32.totalorder %s1781_s16, %s1777_s15  ;;  %p130_p4 = scmp.eq.s32.totalorder %s1360_s20, 1 }
   0x8   : > { %s1855_s24 = scalar_select %p111_p1, %s1785_s17, %s113_s22  }
   0x9   : > { %p1857_p5 = por %p124_p2, %p123_p0  ;;  %p1861_p6 = por %p130_p4, %p129_p3 }
   0xa   : > { %p1363_p7 = scmp.ge.s32.totalorder %s1789_s18, 1  ;;  %p165_p8 = scmp.lt.s32.totalorder %s1789_s18, 3 }
   0xc   : > { %p166_p9 = pnand %p1363_p7, %p165_p8 }
   0xd   : > { %p191_p10 = scmp.lt.s32.totalorder (!%p166_p9), %s1840_s19, 1  ;;  %s1791_s6 = smov (!%p166_p9), 64  }
   0xe   : > { %169 = sbr.rel (%p166_p9) target bundleno = 393 (0x189), region = 36  ;;  %s188_s20 = sand.u32 (!%p166_p9), 1, %s1781_s16  }
   0xf   : > { %s1364_s22 = sshll.u32 (!%p166_p9), %s188_s20, 6  ;;  %s1283_s7 = scalar_lea.sflag (!%p166_p9), [#allocation4], %s188_s20 }
  0x10   : > { %s2376_s23 = scalar_lea.vmem (!%p166_p9), [#allocation3], %s1364_s22  ;;  %s1747_s11 = scalar_lea.hbm (!%p166_p9), %s2470_s4, 128 }
  0x13   : > { %s192_s27 = scalar_select %p191_p10, %s1840_s19, 1  ;;  %vm258_vm0 = vsmask.f32 3328  ;;  %vm259_vm1 = vsmask.f32 7440  ;;  %vm398_vm2 = vcmask 1042432  }
  0x14   : > { %vm399_vm3 = vcmask 1046532   ;;  %vm1929_vm4 = vmor %vm258_vm0, %vm259_vm1  ;;  %v1652_v29 = vld [vmem:[%s2467_s1 + $0xb8] sm:$0xff]  ;;  %vm249_vm6 = vcmask 519168   ;;  %vm381_vm7 = vcmask 1043968   ;;  %vm1011_vm8 = vcmask 523264  }
  0x15   : > { %s1682_s28 = smul.u32 80, %s192_s27  ;;  %vm1935_vm5 = vmor %vm398_vm2, %vm399_vm3  ;;  %vm1233_vm9 = vcmask 1046528   ;;  %s1665_s27 = sshll.u32 %s1840_s19, 6 }
  0x16   : > { %s1294_s30 = scalar_lea.hbm %s2470_s4, %s1665_s27 }
  0x17   : > { %s1872_s5 = scalar_lea.vmem %s2466_s0, %s1682_s28  ;;  %s1297_s19 = sshll.u32 %s1294_s30, 4  ;;  %s1298_s19 = int_to_ptr.hbm [resolvable:$true] %s1297_s19 }
  0x18   : > { %v1875_v0 = vld [vmem:[%s1872_s5 + $0x10] sm:$0xf]  ;;  %v1885_v2 = vld [vmem:[%s1872_s5 + $0x20] sm:$0xf]  ;;  %v1890_v3 = vld [vmem:[%s1872_s5 + $0x18] sm:$0xf] }
  0x19   : > { %v1878_v1 = vld [vmem:[%s1872_s5 + $0x30] sm:$0xf]  ;;  %229 = vrot.lane.b32.xlu0 %v1875_v0, %s1791_s6  ;;  %233 = vrot.lane.b32.xlu2 %v1885_v2, %s1791_s6  ;;  %v1893_v4 = vld [vmem:[%s1872_s5 + $0x38] sm:$0xf]  ;;  %v290_v5 = vshrl.u32 %v1875_v0, 16  ;;  %v293_v6 = vshll.u32 %v1875_v0, 16 }
  0x1a   : > { %237 = vrot.lane.b32.xlu1 %v1878_v1, %s1791_s6  ;;  %v1902_v9 = vld [vmem:[%s1872_s5 + $0x28] sm:$0xf]  ;;  %v1905_v10 = vld [vmem:[%s1872_s5 + $0xc] sm:$0x1]  ;;  %v1908_v11 = vld [vmem:[%s1872_s5 + $0x14] sm:$0x1] }
  0x1b   : > { %v292_v7 = vrot.slane %v290_v5, 4  ;;  %v295_v8 = vrot.slane %v293_v6, 5  ;;  %v1911_v12 = vld [vmem:[%s1872_s5 + $0x8] sm:$0xf]  ;;  %v285_v15 = vshll.u32 %v1905_v10, 16  ;;  %v299_v18 = vshll.u32 %v1908_v11, 16 }
  0x1c   : > { %v276_v13 = vshrl.u32 %v1911_v12, 16  ;;  %v279_v14 = vshll.u32 %v1911_v12, 16  ;;  %v1919_v16 = vld [vmem:[%s1872_s5] sm:$0xf]  ;;  %v1923_v19 = vld [vmem:[%s1872_s5 + $0x4] sm:$0x1] }
  0x1d   : > { %v296_v17 = vor.u32 %v295_v8, %v292_v7  ;;  %v287_v23 = vrot.slane %v285_v15, 5  ;;  %v301_v26 = vrot.slane %v299_v18, 5  ;;  %v1366_v27 = vrot.slane %v1919_v16, 9  ;;  %v1952_v36 = vld [vmem:[%s1872_s5 + $0x1c] sm:$0x1]  ;;  %s1741_s8 = sshra.s32 %s1298_s19, 4  ;;  %s1742_s8 = int_to_ptr.hbm [resolvable:$true] %s1741_s8 }
  0x1e   : > { %v278_v20 = vrot.slane %v276_v13, 4  ;;  %v281_v21 = vrot.slane %v279_v14, 5  ;;  %v403_v28 = vrot.slane %v1923_v19, 5  ;;  %v318_v31 = vshrl.u32 %v1885_v2, 16  ;;  %v1968_v49 = vld [vmem:[%s1872_s5 + $0x24] sm:$0x1]  ;;  %p1748_p0 = scmp.lt.s32.totalorder %s1742_s8, %s2470_s4 }
  0x1f   : > { %v297_v25 = vrot.slane %v296_v17, 4  ;;  %v321_v32 = vshll.u32 %v1885_v2, 16  ;;  %v304_v37 = vshrl.u32 %v1890_v3, 16  ;;  %v307_v38 = vshll.u32 %v1890_v3, 16  ;;  %v1997_v8 = vld [vmem:[%s1872_s5 + $0x2c] sm:$0x1] }
  0x20   : > { %v282_v22 = vor.u32 %v281_v21, %v278_v20  ;;  %v404_v35 = vsel %vm1935_vm5, %v1366_v27, %v403_v28  ;;  %v1367_v39 = vrot.slane %v1911_v12, 9  ;;  %v407_v40 = vrot.slane %v1905_v10, 5  ;;  %v2000_v15 = vld [vmem:[%s1872_s5 + $0x34] sm:$0x1] }
  0x21   : > { %231 = vrot.lane.b32.xlu0 %v1890_v3, %s1791_s6  ;;  %235 = vrot.lane.b32.xlu2 %v1902_v9, %s1791_s6  ;;  %v1947_v34 = vsel %vm1929_vm4, %v297_v25, %v301_v26  ;;  %v1368_v41 = vrot.slane %v1875_v0, 9  ;;  %v411_v42 = vrot.slane %v1908_v11, 5  ;;  %v306_v43 = vrot.slane %v304_v37, 4 }
  0x22   : > { %239 = vrot.lane.b32.xlu1 %v1893_v4, %s1791_s6  ;;  %v283_v30 = vrot.slane %v282_v22, 4  ;;  %v309_v44 = vrot.slane %v307_v38, 5  ;;  %v1369_v45 = vrot.slane %v1890_v3, 9  ;;  %v415_v46 = vrot.slane %v1952_v36, 5  ;;  %v1636_v38 = vld [vmem:[%s2467_s1 + $0x38] sm:$0xff] }
  0x23   : > { %v320_v47 = vrot.slane %v318_v31, 4  ;;  %v323_v48 = vrot.slane %v321_v32, 5  ;;  %v1972_v50 = vsel %vm1935_vm5, %v1367_v39, %v407_v40  ;;  %v313_v52 = vshll.u32 %v1952_v36, 16  ;;  %1667 = vmatpush.bf16.msra.mxu2 %v1636_v38  ;;  %1666 = vmatpush.bf16.msra.mxu1 %v1636_v38 }
  0x24   : > { %v1943_v33 = vsel %vm1929_vm4, %v283_v30, %v287_v23  ;;  %v310_v51 = vor.u32 %v309_v44, %v306_v43  ;;  %v1977_v53 = vsel %vm1935_vm5, %v1368_v41, %v411_v42  ;;  %v1981_v54 = vsel %vm1935_vm5, %v1369_v45, %v415_v46  ;;  %v2030_v43 = vld [vmem:[%s1872_s5 + $0x40] sm:$0xf]  ;;  %v2033_v44 = vld [vmem:[%s1872_s5 + $0x3c] sm:$0x1]  ;;  %v1635_v46 = vld [vmem:[%s2467_s1 + $0x30] sm:$0xff]  ;;  %1024 = vmatpush.bf16.msra.mxu0 %v1636_v38 }
  0x25   : > { %v324_v55 = vor.u32 %v323_v48, %v320_v47  ;;  %v327_v56 = vshll.u32 %v1968_v49, 16  ;;  %v332_v57 = vshrl.u32 %v1902_v9, 16  ;;  %v335_v58 = vshll.u32 %v1902_v9, 16 }
  0x26   : > { %v346_v59 = vshrl.u32 %v1878_v1, 16  ;;  %v349_v60 = vshll.u32 %v1878_v1, 16  ;;  %v311_v61 = vrot.slane %v310_v51, 4  ;;  %v315_v62 = vrot.slane %v313_v52, 5 }
  0x27   : > { %v325_v63 = vrot.slane %v324_v55, 4  ;;  %v329_v5 = vrot.slane %v327_v56, 5  ;;  %v1370_v6 = vrot.slane %v1885_v2, 9  ;;  %v419_v7 = vrot.slane %v1968_v49, 5  ;;  %1669 = vmatpush.bf16.msra.mxu2 %v1635_v46  ;;  %1668 = vmatpush.bf16.msra.mxu1 %v1635_v46 }
  0x28   : > { %v334_v13 = vrot.slane %v332_v57, 4  ;;  %v337_v14 = vrot.slane %v335_v58, 5  ;;  %v348_v17 = vrot.slane %v346_v59, 4  ;;  %v351_v18 = vrot.slane %v349_v60, 5  ;;  %1025 = vmatpush.bf16.msra.mxu0 %v1635_v46  ;;  %v1630_v46 = vld [vmem:[%s2467_s1 + $0x8] sm:$0xff] }
  0x29   : > { %225 = vrot.lane.b32.xlu0 %v1919_v16, %s1791_s6  ;;  %487 = vrot.lane.b32.xlu2 %v1943_v33, %s1791_s6  ;;  %v2004_v20 = vsel %vm1929_vm4, %v311_v61, %v315_v62  ;;  %v2008_v21 = vsel %vm1929_vm4, %v325_v63, %v329_v5  ;;  %v2012_v22 = vsel %vm1935_vm5, %v1370_v6, %v419_v7  ;;  %v341_v23 = vshll.u32 %v1997_v8, 16  ;;  %v1634_v61 = vld [vmem:[%s2467_s1 + $0x28] sm:$0xff]  ;;  %v2061_v62 = vld [vmem:[%s1872_s5 + $0x44] sm:$0x1] }
  0x2a   : > { %227 = vrot.lane.b32.xlu1 %v1911_v12, %s1791_s6  ;;  %v355_v25 = vshll.u32 %v2000_v15, 16  ;;  %v338_v26 = vor.u32 %v337_v14, %v334_v13  ;;  %v352_v27 = vor.u32 %v351_v18, %v348_v17  ;;  %v360_v28 = vshrl.u32 %v1893_v4, 16  ;;  %v1633_v18 = vld [vmem:[%s2467_s1 + $0x20] sm:$0xff] }
  0x2b   : > { %v363_v30 = vshll.u32 %v1893_v4, 16  ;;  %v1371_v31 = vrot.slane %v1902_v9, 9  ;;  %v423_v32 = vrot.slane %v1997_v8, 5  ;;  %v474_v47 = vshrl.u32 %v2030_v43, 16  ;;  %1671 = vmatpush.bf16.msra.mxu2 %v1634_v61  ;;  %1670 = vmatpush.bf16.msra.mxu1 %v1634_v61 }
  0x2c   : > { %v357_v37 = vrot.slane %v355_v25, 5  ;;  %v339_v39 = vrot.slane %v338_v26, 4  ;;  %v353_v40 = vrot.slane %v352_v27, 4  ;;  %v362_v41 = vrot.slane %v360_v28, 4  ;;  %1026 = vmatpush.bf16.msra.mxu0 %v1634_v61  ;;  %v1632_v28 = vld [vmem:[%s2467_s1 + $0x18] sm:$0xff] }
  0x2d   : > { %v365_v42 = vrot.slane %v363_v30, 5  ;;  %v2037_v45 = vsel %vm1935_vm5, %v1371_v31, %v423_v32  ;;  %v477_v48 = vshll.u32 %v2030_v43, 16  ;;  %v369_v56 = vshll.u32 %v2033_v44, 16  ;;  %v1631_v31 = vld [vmem:[%s2467_s1 + $0x10] sm:$0xff]  ;;  %v2102_v32 = vld [vmem:[%s1872_s5 + $0x48] sm:$0xf] }
  0x2e   : > { %v2050_v52 = vsel %vm1929_vm4, %v353_v40, %v357_v37  ;;  %v1372_v57 = vrot.slane %v1878_v1, 9  ;;  %v427_v58 = vrot.slane %v2000_v15, 5  ;;  %v476_v59 = vrot.slane %v474_v47, 4  ;;  %v1629_v47 = vld [vmem:[%s2467_s1] sm:$0xff] }
  0x2f   : > { %v366_v55 = vor.u32 %v365_v42, %v362_v41  ;;  %v479_v60 = vrot.slane %v477_v48, 5  ;;  %v1373_v63 = vrot.slane %v1893_v4, 9  ;;  %v431_v5 = vrot.slane %v2033_v44, 5  ;;  %1673 = vmatpush.bf16.msra.mxu2 %v1633_v18  ;;  %1672 = vmatpush.bf16.msra.mxu1 %v1633_v18 }
  0x30   : > { %v371_v7 = vrot.slane %v369_v56, 5  ;;  %v2071_v13 = vsel %vm1935_vm5, %v1372_v57, %v427_v58  ;;  %v483_v17 = vshll.u32 %v2061_v62, 16  ;;  %1027 = vmatpush.bf16.msra.mxu0 %v1633_v18  ;;  %v1374_v37 = vrot.slane %v2030_v43, 9  ;;  %v1660_v56 = vld [vmem:[%s2467_s1 + $0xf8] sm:$0xff]  ;;  %v1651_v57 = vld [vmem:[%s2467_s1 + $0xb0] sm:$0xff]  ;;  %v1657_v18 = vld [vmem:[%s2467_s1 + $0xe0] sm:$0xff] }
  0x31   : > { %489 = vrot.lane.b32.xlu0 %v1947_v34, %s1791_s6  ;;  %435 = vrot.lane.b32.xlu2 %v1972_v50, %s1791_s6  ;;  %v367_v6 = vrot.slane %v366_v55, 4  ;;  %v480_v14 = vor.u32 %v479_v60, %v476_v59  ;;  %v523_v38 = vrot.slane %v2061_v62, 5  ;;  %v262_v48 = vshrl.u32 %v1919_v16, 16 }
  0x32   : > { %433 = vrot.lane.b32.xlu1 %v404_v35, %s1791_s6  ;;  %v343_v35 = vrot.slane %v341_v23, 5  ;;  %v2079_v23 = vsel %vm1935_vm5, %v1373_v63, %v431_v5  ;;  %v485_v27 = vrot.slane %v483_v17, 5  ;;  %v265_v55 = vshll.u32 %v1919_v16, 16  ;;  %1111 = vmatpush.bf16.msra.mxu3 %v1660_v56  ;;  %v1659_v16 = vld [vmem:[%s2467_s1 + $0xf0] sm:$0xff]  ;;  %v1650_v63 = vld [vmem:[%s2467_s1 + $0xa8] sm:$0xff]  ;;  %v1649_v17 = vld [vmem:[%s2467_s1 + $0xa0] sm:$0xff] }
  0x33   : > { %v2083_v25 = vsel %vm1929_vm4, %v367_v6, %v371_v7  ;;  %v481_v26 = vrot.slane %v480_v14, 4  ;;  %1675 = vmatpush.bf16.msra.mxu2 %v1632_v28  ;;  %1674 = vmatpush.bf16.msra.mxu1 %v1632_v28  ;;  %v2119_v41 = vsel %vm1935_vm5, %v1374_v37, %v523_v38  ;;  %v264_v58 = vrot.slane %v262_v48, 4  ;;  %v1644_v14 = vld [vmem:[%s2467_s1 + $0x78] sm:$0xff]  ;;  %v1642_v37 = vld [vmem:[%s2467_s1 + $0x68] sm:$0xff]  ;;  %v1647_v38 = vld [vmem:[%s2467_s1 + $0x90] sm:$0xff] }
  0x34   : > { %v2046_v51 = vsel %vm1929_vm4, %v339_v39, %v343_v35  ;;  %1028 = vmatpush.bf16.msra.mxu0 %v1632_v28  ;;  %v2107_v35 = vld [vmem:[%s1872_s5 + $0x4c] sm:$0x1]  ;;  %v1375_v39 = vrot.slane %v2102_v32, 9  ;;  %v267_v59 = vrot.slane %v265_v55, 5  ;;  %v271_v60 = vshll.u32 %v1923_v19, 16  ;;  %v1648_v28 = vld [vmem:[%s2467_s1 + $0x98] sm:$0xff] }
  0x35   : > { %v2096_v30 = vsel %vm1929_vm4, %v481_v26, %v485_v27  ;;  %v583_v40 = vrot.slane %v2107_v35, 5  ;;  %v1658_v19 = vld [vmem:[%s2467_s1 + $0xe8] sm:$0xff]  ;;  %v1643_v27 = vld [vmem:[%s2467_s1 + $0x70] sm:$0xff]  ;;  %v1645_v56 = vld [vmem:[%s2467_s1 + $0x80] sm:$0xff]  ;;  %s1295_s5 = sshll.u32 %s2376_s23, 4  ;;  %s1296_s5 = int_to_ptr.vmem [resolvable:$true] %s1295_s5 }
  0x36   : > { %1112 = vmatpush.bf16.msra.mxu3 %v1659_v16  ;;  %v2157_v5 = vrot.slane %v271_v60, 5  ;;  %v268_v6 = vor.u32 %v267_v59, %v264_v58  ;;  %v1654_v48 = vld [vmem:[%s2467_s1 + $0xc8] sm:$0xff]  ;;  %v1663_v55 = vld [vmem:[%s2467_s1 + $0x110] sm:$0xff] }
  0x37   : > { %1677 = vmatpush.bf16.msra.mxu2 %v1631_v31  ;;  %1676 = vmatpush.bf16.msra.mxu1 %v1631_v31  ;;  %v584_v42 = vsel %vm1935_vm5, %v1375_v39, %v583_v40  ;;  %v1655_v40 = vld [vmem:[%s2467_s1 + $0xd0] sm:$0xff]  ;;  %v1638_v16 = vld [vmem:[%s2467_s1 + $0x48] sm:$0xff] }
  0x38   : > { %1029 = vmatpush.bf16.msra.mxu0 %v1631_v31  ;;  %v2161_v7 = vrot.slane %v268_v6, 4  ;;  %v1656_v31 = vld [vmem:[%s2467_s1 + $0xd8] sm:$0xff]  ;;  %v1639_v58 = vld [vmem:[%s2467_s1 + $0x50] sm:$0xff] }
  0x39   : > { %437 = vrot.lane.b32.xlu0 %v1977_v53, %s1791_s6  ;;  %491 = vrot.lane.b32.xlu2 %v2004_v20, %s1791_s6 }
  0x3a   : > { %439 = vrot.lane.b32.xlu1 %v1981_v54, %s1791_s6  ;;  %1113 = vmatpush.bf16.msra.mxu3 %v1658_v19 }
  0x3b   : > { %1679 = vmatpush.bf16.msra.mxu2 %v1630_v46  ;;  %1678 = vmatpush.bf16.msra.mxu1 %v1630_v46 }
  0x3c   : > { %1030 = vmatpush.bf16.msra.mxu0 %v1630_v46  ;;  %v1646_v46 = vld [vmem:[%s2467_s1 + $0x88] sm:$0xff] }
  0x3e   : > { %1114 = vmatpush.bf16.msra.mxu3 %v1657_v18 }
  0x3f   : > { %1681 = vmatpush.bf16.msra.mxu2 %v1629_v47  ;;  %1680 = vmatpush.bf16.msra.mxu1 %v1629_v47 }
  0x40   : > { %1031 = vmatpush.bf16.msra.mxu0 %v1629_v47 }
  0x41   : > { %493 = vrot.lane.b32.xlu0 %v2008_v21, %s1791_s6  ;;  %443 = vrot.lane.b32.xlu2 %v2037_v45, %s1791_s6 }
  0x42   : > { %441 = vrot.lane.b32.xlu1 %v2012_v22, %s1791_s6  ;;  %1115 = vmatpush.bf16.msra.mxu3 %v1656_v31 }
  0x43   : > { %1082 = vmatpush.bf16.msrb.mxu2 %v1652_v29  ;;  %1053 = vmatpush.bf16.msrb.mxu1 %v1644_v14 }
  0x46   : > { %1116 = vmatpush.bf16.msra.mxu3 %v1655_v40 }
  0x47   : > { %1083 = vmatpush.bf16.msrb.mxu2 %v1651_v57  ;;  %1054 = vmatpush.bf16.msrb.mxu1 %v1643_v27  ;;  %v1653_v57 = vld [vmem:[%s2467_s1 + $0xc0] sm:$0xff] }
  0x49   : > { %495 = vrot.lane.b32.xlu0 %v2046_v51, %s1791_s6  ;;  %445 = vrot.lane.b32.xlu2 %v2071_v13, %s1791_s6 }
  0x4a   : > { %497 = vrot.lane.b32.xlu1 %v2050_v52, %s1791_s6  ;;  %1117 = vmatpush.bf16.msra.mxu3 %v1654_v48 }
  0x4b   : > { %1084 = vmatpush.bf16.msrb.mxu2 %v1650_v63  ;;  %1055 = vmatpush.bf16.msrb.mxu1 %v1642_v37 }
  0x4e   : > { %1118 = vmatpush.bf16.msra.mxu3 %v1653_v57 }
  0x4f   : > { %1085 = vmatpush.bf16.msrb.mxu2 %v1649_v17 }
  0x51   : > { %447 = vrot.lane.b32.xlu0 %v2079_v23, %s1791_s6  ;;  %501 = vrot.lane.b32.xlu2 %v2096_v30, %s1791_s6 }
  0x52   : > { %499 = vrot.lane.b32.xlu1 %v2083_v25, %s1791_s6 }
  0x53   : > { %1086 = vmatpush.bf16.msrb.mxu2 %v1648_v28 }
  0x57   : > { %1087 = vmatpush.bf16.msrb.mxu2 %v1647_v38 }
  0x59   : > { %542 = vrot.lane.b32.xlu0 %v2030_v43, %s1791_s6  ;;  %585 = vrot.lane.b32.xlu2 %v2119_v41, %s1791_s6 }
  0x5a   : > { %544 = vrot.lane.b32.xlu1 %v2102_v32, %s1791_s6 }
  0x5b   : > { %1088 = vmatpush.bf16.msrb.mxu2 %v1646_v46  ;;  %v560_v46 = vshll.u32 %v2102_v32, 16 }
  0x5f   : > { %1089 = vmatpush.bf16.msrb.mxu2 %v1645_v56 }
  0x61   : > { %587 = vrot.lane.b32.xlu0 %v584_v42, %s1791_s6  ;;  %v1664_v42 = vld [vmem:[%s2467_s1 + $0x118] sm:$0xff]  ;;  %s1743_s6 = scalar_lea.hbm %s1742_s8, 64 }
  0x62   : > { %1144 = vmatpush.bf16.msrb.mxu0 %v1664_v42  ;;  %v557_v42 = vshrl.u32 %v2102_v32, 16  ;;  %p1744_p11 = scmp.ne.s32.totalorder %s1742_s8, %s1743_s6  ;;  %p1749_p1 = scmp.lt.s32.totalorder %s1747_s11, %s1743_s6 }
  0x64   : > { %v559_v57 = vrot.slane %v557_v42, 4  ;;  %p1745_p12 = pnand %p1744_p11, %p1857_p5  ;;  %p1750_p2 = por %p1749_p1, %p1748_p0 }
  0x66   : > { %1145 = vmatpush.bf16.msrb.mxu0 %v1663_v55  ;;  %p1746_p13 = pneg %p1745_p12 }
  0x68   : > { %p1751_p3 = pnand %p1750_p2, %p1746_p13 }
  0x73   : > { %v234_v61 = vpop.permute.xlu2 %233 }
  0x74   : > { %254 = vst.msk [vmem:[#allocation2 + $0x50] sm:$0xf] %vm249_vm6, %v234_v61 }
  0x75   : > { %386 = vst.msk [vmem:[#allocation2 + $0x50] sm:$0xf] %vm381_vm7, %v2008_v21 }
  0x76   : > { %550 = vst.msk [vmem:[#allocation2 + $0x34] sm:$0xf] %vm249_vm6, %v234_v61  ;;  %v1662_v61 = vld [vmem:[%s2467_s1 + $0x108] sm:$0xff] }
  0x77   : > { %574 = vst.msk [vmem:[#allocation2 + $0x34] sm:$0xf] %vm381_vm7, %v2008_v21  ;;  %v274_v21 = vsel %vm1929_vm4, %v2161_v7, %v2157_v5  ;;  %1146 = vmatpush.bf16.msrb.mxu0 %v1662_v61 }
  0x7b   : > { %v236_v26 = vpop.permute.xlu2 %235 }
  0x7c   : > { %255 = vst.msk [vmem:[#allocation2 + $0x64] sm:$0xf] %vm249_vm6, %v236_v26  ;;  %v1418_v40 = vld [vmem:[#allocation2 + $0x50] sm:$0xf] }
  0x7d   : > { %387 = vst.msk [vmem:[#allocation2 + $0x64] sm:$0xf] %vm381_vm7, %v2046_v51 }
  0x7e   : > { %551 = vst.msk [vmem:[#allocation2 + $0x48] sm:$0xf] %vm249_vm6, %v236_v26 }
  0x7f   : > { %575 = vst.msk [vmem:[#allocation2 + $0x48] sm:$0xf] %vm381_vm7, %v2046_v51  ;;  %v1641_v51 = vld [vmem:[%s2467_s1 + $0x60] sm:$0xff] }
  0x80   : > { %1056 = vmatpush.bf16.msrb.mxu1 %v1641_v51 }
  0x83   : > { %v488_v39 = vpop.permute.xlu2 %487 }
  0x84   : > { %511 = vst.msk [vmem:[#allocation2 + $0x8] sm:$0xf] %vm249_vm6, %v488_v39  ;;  %v1621_v51 = vld [vmem:[#allocation2 + $0x60] sm:$0xf0] }
  0x85   : > { %533 = vst.msk [vmem:[#allocation2 + $0x8] sm:$0xf] %vm381_vm7, %v1972_v50  ;;  %v1640_v50 = vld [vmem:[%s2467_s1 + $0x58] sm:$0xff] }
  0x86   : > { %1057 = vmatpush.bf16.msrb.mxu1 %v1640_v50 }
  0x8a   : > { %1058 = vmatpush.bf16.msrb.mxu1 %v1639_v58  ;;  %v562_v58 = vrot.slane %v560_v46, 5 }
  0x8b   : > { %v230_v47 = vpop.permute.xlu0 %229 }
  0x8c   : > { %v238_v29 = vpop.permute.xlu1 %237  ;;  %252 = vst.msk [vmem:[#allocation2 + $0x28] sm:$0xf] %vm249_vm6, %v230_v47  ;;  %v1386_v50 = vld [vmem:[#allocation2 + $0x8] sm:$0xf] }
  0x8d   : > { %384 = vst.msk [vmem:[#allocation2 + $0x28] sm:$0xf] %vm381_vm7, %v1947_v34 }
  0x8e   : > { %548 = vst.msk [vmem:[#allocation2 + $0xc] sm:$0xf] %vm249_vm6, %v230_v47  ;;  %1059 = vmatpush.bf16.msrb.mxu1 %v1638_v16  ;;  %v1419_v47 = vor.u32 %v1621_v51, %v1418_v40 }
  0x8f   : > { %572 = vst.msk [vmem:[#allocation2 + $0xc] sm:$0xf] %vm381_vm7, %v1947_v34  ;;  %v436_v34 = vpop.permute.xlu2 %435 }
  0x90   : > { %256 = vst.msk [vmem:[#allocation2 + $0x78] sm:$0xf] %vm249_vm6, %v238_v29 }
  0x91   : > { %388 = vst.msk [vmem:[#allocation2 + $0x78] sm:$0xf] %vm381_vm7, %v2050_v52 }
  0x92   : > { %552 = vst.msk [vmem:[#allocation2 + $0x5c] sm:$0xf] %vm249_vm6, %v238_v29 }
  0x93   : > { %576 = vst.msk [vmem:[#allocation2 + $0x5c] sm:$0xf] %vm381_vm7, %v2050_v52  ;;  %v232_v59 = vpop.permute.xlu0 %231  ;;  %v1661_v52 = vld [vmem:[%s2467_s1 + $0x100] sm:$0xff] }
  0x94   : > { %v240_v60 = vpop.permute.xlu1 %239  ;;  %253 = vst.msk [vmem:[#allocation2 + $0x3c] sm:$0xf] %vm249_vm6, %v232_v59  ;;  %1147 = vmatpush.bf16.msrb.mxu0 %v1661_v52  ;;  %v1398_v63 = vld [vmem:[#allocation2 + $0x28] sm:$0xf] }
  0x95   : > { %385 = vst.msk [vmem:[#allocation2 + $0x3c] sm:$0xf] %vm381_vm7, %v2004_v20 }
  0x96   : > { %549 = vst.msk [vmem:[#allocation2 + $0x20] sm:$0xf] %vm249_vm6, %v232_v59  ;;  %v1610_v18 = vld [vmem:[#allocation2 + $0xc] sm:$0xf]  ;;  %v566_v59 = vshll.u32 %v2107_v35, 16  ;;  %v563_v35 = vor.u32 %v562_v58, %v559_v57 }
  0x97   : > { %573 = vst.msk [vmem:[#allocation2 + $0x20] sm:$0xf] %vm381_vm7, %v2004_v20  ;;  %v492_v19 = vpop.permute.xlu2 %491  ;;  %v1637_v20 = vld [vmem:[%s2467_s1 + $0x40] sm:$0xff] }
  0x98   : > { %257 = vst.msk [vmem:[#allocation2 + $0x8c] sm:$0xf] %vm249_vm6, %v240_v60  ;;  %1060 = vmatpush.bf16.msrb.mxu1 %v1637_v20  ;;  %v1438_v27 = vld [vmem:[#allocation2 + $0x78] sm:$0xf]  ;;  %v564_v52 = vrot.slane %v563_v35, 4 }
  0x99   : > { %389 = vst.msk [vmem:[#allocation2 + $0x8c] sm:$0xf] %vm381_vm7, %v2083_v25 }
  0x9a   : > { %553 = vst.msk [vmem:[#allocation2 + $0x70] sm:$0xf] %vm249_vm6, %v240_v60  ;;  %v2304_v60 = vrot.slane %v566_v59, 5 }
  0x9b   : > { %577 = vst.msk [vmem:[#allocation2 + $0x70] sm:$0xf] %vm381_vm7, %v2083_v25  ;;  %v226_v14 = vpop.permute.xlu0 %225 }
  0x9c   : > { %v228_v6 = vpop.permute.xlu1 %227  ;;  %v1616_v17 = vld [vmem:[#allocation2 + $0x38] sm:$0xf0]  ;;  %250 = vst.msk [vmem:[#allocation2] sm:$0xf] %vm249_vm6, %v226_v14  ;;  %v569_v14 = vsel %vm1929_vm4, %v564_v52, %v2304_v60 }
  0x9d   : > { %251 = vst.msk [vmem:[#allocation2 + $0x14] sm:$0xf] %vm249_vm6, %v228_v6  ;;  %v1399_v26 = vor.u32 %v1616_v17, %v1398_v63 }
  0x9e   : > { %383 = vst.msk [vmem:[#allocation2 + $0x14] sm:$0xf] %vm381_vm7, %v1943_v33  ;;  %v1388_v28 = vld [vmem:[#allocation2 + $0x1c] sm:$0xf0] }
  0x9f   : > { %382 = vst.msk [vmem:[#allocation2] sm:$0xf] %vm381_vm7, %v274_v21  ;;  %1037 = vmatmul.bf16.vlgmr.msra.gmra.mxu1 %v1399_v26  ;;  %v1391_v25 = vor.u32 %v1610_v18, %v1388_v28  ;;  %v444_v7 = vpop.permute.xlu2 %443 }
  0xa0   : > { %v1626_v31 = vld [vmem:[#allocation2 + $0x88] sm:$0xf0]  ;;  %458 = vst.msk [vmem:[#allocation2 + $0x18] sm:$0xf] %vm249_vm6, %v436_v34 }
  0xa1   : > { %v1439_v37 = vor.u32 %v1626_v31, %v1438_v27  ;;  %466 = vst.msk [vmem:[#allocation2 + $0x18] sm:$0xf] %vm381_vm7, %v1875_v0  ;;  %1119 = vmatmul.bf16.vlgmr.msra.gmra.mxu3 %v1391_v25 }
  0xa2   : > { %513 = vst.msk [vmem:[#allocation2 + $0x30] sm:$0xf] %vm249_vm6, %v492_v19  ;;  %v1428_v26 = vld [vmem:[#allocation2 + $0x6c] sm:$0xf0] }
  0xa3   : > { %1047 = vmatmul.bf16.vlgmr.msra.gmra.mxu2 %v1439_v37  ;;  %v490_v33 = vpop.permute.xlu0 %489  ;;  %535 = vst.msk [vmem:[#allocation2 + $0x30] sm:$0xf] %vm381_vm7, %v1981_v54  ;;  %v1615_v54 = vld [vmem:[#allocation2 + $0x34] sm:$0xf] }
  0xa4   : > { %v434_v38 = vpop.permute.xlu1 %433  ;;  %512 = vst.msk [vmem:[#allocation2 + $0x1c] sm:$0xf] %vm249_vm6, %v490_v33 }
  0xa5   : > { %v1611_v5 = vld [vmem:[#allocation2 + $0x10] sm:$0xf0]  ;;  %534 = vst.msk [vmem:[#allocation2 + $0x1c] sm:$0xf] %vm381_vm7, %v1977_v53  ;;  %v1408_v53 = vld [vmem:[#allocation2 + $0x44] sm:$0xf0] }
  0xa6   : > { %457 = vst.msk [vmem:[#allocation2 + $0x4] sm:$0xf] %vm249_vm6, %v434_v38  ;;  %v1378_v21 = vld [vmem:[#allocation2] sm:$0xf]  ;;  %v1411_v56 = vor.u32 %v1615_v54, %v1408_v53 }
  0xa7   : > { %465 = vst.msk [vmem:[#allocation2 + $0x4] sm:$0xf] %vm381_vm7, %v1911_v12  ;;  %v1379_v39 = vor.u32 %v1611_v5, %v1378_v21  ;;  %v446_v34 = vpop.permute.xlu2 %445 }
  0xa8   : > { %462 = vst.msk [vmem:[#allocation2 + $0x68] sm:$0xf] %vm249_vm6, %v444_v7  ;;  %v1380_v19 = vld [vmem:[#allocation2 + $0x14] sm:$0xf0] }
  0xa9   : > { %1032 = vmatmul.bf16.vlgmr.msra.gmra.mxu0 %v1379_v39  ;;  %470 = vst.msk [vmem:[#allocation2 + $0x68] sm:$0xf] %vm381_vm7, %v1878_v1 }
  0xaa   : > { %594 = vst.msk [vmem:[#allocation2 + $0x4c] sm:$0xf] %vm249_vm6, %v444_v7  ;;  %v1406_v24 = vld [vmem:[#allocation2 + $0x30] sm:$0xf] }
  0xab   : > { %v438_v29 = vpop.permute.xlu0 %437  ;;  %463 = vst.msk [vmem:[#allocation2 + $0x7c] sm:$0xf] %vm249_vm6, %v446_v34 }
  0xac   : > { %v440_v48 = vpop.permute.xlu1 %439  ;;  %459 = vst.msk [vmem:[#allocation2 + $0x2c] sm:$0xf] %vm249_vm6, %v438_v29  ;;  %v1612_v55 = vld [vmem:[#allocation2 + $0x18] sm:$0xf0] }
  0xad   : > { %467 = vst.msk [vmem:[#allocation2 + $0x2c] sm:$0xf] %vm381_vm7, %v1890_v3  ;;  %v1387_v32 = vor.u32 %v1612_v55, %v1386_v50 }
  0xae   : > { %591 = vst.msk [vmem:[#allocation2 + $0x10] sm:$0xf] %vm249_vm6, %v438_v29  ;;  %v1609_v17 = vld [vmem:[#allocation2 + $0x4] sm:$0xf] }
  0xaf   : > { %1042 = vmatmul.bf16.gmra.mxu1 %v1419_v47  ;;  %460 = vst.msk [vmem:[#allocation2 + $0x40] sm:$0xf] %vm249_vm6, %v440_v48  ;;  %v502_v6 = vpop.permute.xlu2 %501  ;;  %v1383_v27 = vor.u32 %v1609_v17, %v1380_v19 }
  0xb0   : > { %468 = vst.msk [vmem:[#allocation2 + $0x40] sm:$0xf] %vm381_vm7, %v1885_v2  ;;  %v1420_v57 = vld [vmem:[#allocation2 + $0x64] sm:$0xf0] }
  0xb1   : > { %592 = vst.msk [vmem:[#allocation2 + $0x24] sm:$0xf] %vm249_vm6, %v440_v48  ;;  %1124 = vmatmul.bf16.gmra.mxu3 %v1411_v56  ;;  %v1618_v21 = vld [vmem:[#allocation2 + $0x48] sm:$0xf0] }
  0xb2   : > { %471 = vst.msk [vmem:[#allocation2 + $0x7c] sm:$0xf] %vm381_vm7, %v1893_v4 }
  0xb3   : > { %1090 = vmatmul.bf16.vlgmr.msrb.gmra.mxu2 %v1387_v32  ;;  %v494_v61 = vpop.permute.xlu0 %493  ;;  %595 = vst.msk [vmem:[#allocation2 + $0x60] sm:$0xf] %vm249_vm6, %v446_v34 }
  0xb4   : > { %v442_v16 = vpop.permute.xlu1 %441  ;;  %514 = vst.msk [vmem:[#allocation2 + $0x44] sm:$0xf] %vm249_vm6, %v494_v61 }
  0xb5   : > { %536 = vst.msk [vmem:[#allocation2 + $0x44] sm:$0xf] %vm381_vm7, %v2012_v22  ;;  %v1394_v63 = vld [vmem:[#allocation2 + $0x10] sm:$0xf]  ;;  %v1620_v22 = vld [vmem:[#allocation2 + $0x5c] sm:$0xf] }
  0xb6   : > { %461 = vst.msk [vmem:[#allocation2 + $0x54] sm:$0xf] %vm249_vm6, %v442_v16  ;;  %v1431_v37 = vor.u32 %v1620_v22, %v1428_v26 }
  0xb7   : > { %469 = vst.msk [vmem:[#allocation2 + $0x54] sm:$0xf] %vm381_vm7, %v1902_v9  ;;  %v586_v38 = vpop.permute.xlu2 %585  ;;  %v1400_v39 = vld [vmem:[#allocation2 + $0x3c] sm:$0xf0] }
  0xb8   : > { %v1613_v20 = vld [vmem:[#allocation2 + $0x20] sm:$0xf0]  ;;  %593 = vst.msk [vmem:[#allocation2 + $0x38] sm:$0xf] %vm249_vm6, %v442_v16 }
  0xb9   : > { %v1395_v18 = vor.u32 %v1613_v20, %v1394_v63  ;;  %518 = vst.msk [vmem:[#allocation2 + $0x94] sm:$0xf] %vm249_vm6, %v502_v6  ;;  %v1624_v35 = vld [vmem:[#allocation2 + $0x7c] sm:$0xf] }
  0xba   : > { %540 = vst.msk [vmem:[#allocation2 + $0x94] sm:$0xf] %vm381_vm7, %v2119_v41 }
  0xbb   : > { %1600 = vmatmul.msk.bf16.vlgmr.msrb.gmra.mxu0 %vm1011_vm8, %v1395_v18  ;;  %v496_v28 = vpop.permute.xlu0 %495  ;;  %597 = vst.msk [vmem:[#allocation2 + $0x88] sm:$0xf] %vm249_vm6, %v586_v38 }
  0xbc   : > { %v498_v25 = vpop.permute.xlu1 %497  ;;  %v1617_v31 = vld [vmem:[#allocation2 + $0x40] sm:$0xf0]  ;;  %515 = vst.msk [vmem:[#allocation2 + $0x58] sm:$0xf] %vm249_vm6, %v496_v28 }
  0xbd   : > { %537 = vst.msk [vmem:[#allocation2 + $0x58] sm:$0xf] %vm381_vm7, %v2037_v45  ;;  %v1407_v33 = vor.u32 %v1617_v31, %v1406_v24 }
  0xbe   : > { %516 = vst.msk [vmem:[#allocation2 + $0x6c] sm:$0xf] %vm249_vm6, %v498_v25  ;;  %v1619_v34 = vld [vmem:[#allocation2 + $0x54] sm:$0xf] }
  0xbf   : > { %1061 = vmatmul.bf16.vlgmr.msrb.gmra.mxu1 %v1383_v27  ;;  %538 = vst.msk [vmem:[#allocation2 + $0x6c] sm:$0xf] %vm381_vm7, %v2071_v13  ;;  %v1414_v7 = vld [vmem:[#allocation2 + $0x38] sm:$0xf]  ;;  %v1614_v13 = vld [vmem:[#allocation2 + $0x2c] sm:$0xf] }
  0xc0   : > { %v1415_v45 = vor.u32 %v1618_v21, %v1414_v7  ;;  %v1403_v40 = vor.u32 %v1614_v13, %v1400_v39  ;;  %v2366_v39 = vld [vmem:[%s2469_s3] ss:$0 sm:$0xff] }
  0xc1   : > { %1129 = vmatmul.bf16.gmra.mxu3 %v1431_v37  ;;  %v1627_v59 = vld [vmem:[#allocation2 + $0x90] sm:$0xf0] }
  0xc2   : > { %v1454_v60 = vld [vmem:[#allocation2 + $0x88] sm:$0xf] }
  0xc3   : > { %1095 = vmatmul.bf16.gmra.mxu2 %v1407_v33  ;;  %v448_v41 = vpop.permute.xlu0 %447 }
  0xc4   : > { %v500_v5 = vpop.permute.xlu1 %499  ;;  %464 = vst.msk [vmem:[#allocation2 + $0x90] sm:$0xf] %vm249_vm6, %v448_v41  ;;  %v1426_v53 = vld [vmem:[#allocation2 + $0x58] sm:$0xf] }
  0xc5   : > { %472 = vst.msk [vmem:[#allocation2 + $0x90] sm:$0xf] %vm381_vm7, %v2030_v43 }
  0xc6   : > { %596 = vst.msk [vmem:[#allocation2 + $0x74] sm:$0xf] %vm249_vm6, %v448_v41  ;;  %v1622_v42 = vld [vmem:[#allocation2 + $0x68] sm:$0xf0]  ;;  %v1201_v41 = vunpack.c.l.bf16 %v1911_v12 }
  0xc7   : > { %517 = vst.msk [vmem:[#allocation2 + $0x80] sm:$0xf] %vm249_vm6, %v500_v5  ;;  %v1427_v46 = vor.u32 %v1622_v42, %v1426_v53  ;;  %v1202_v5 = vunpack.c.l.bf16 %v1905_v10 }
  0xc8   : > { %539 = vst.msk [vmem:[#allocation2 + $0x80] sm:$0xf] %vm381_vm7, %v2079_v23  ;;  %v1434_v23 = vld [vmem:[#allocation2 + $0x60] sm:$0xf] }
  0xcb   : > { %1601 = vmatmul.msk.bf16.gmra.mxu0 %vm1011_vm8, %v1415_v45  ;;  %v543_v51 = vpop.permute.xlu0 %542  ;;  %v2361_v45 = vld [vmem:[%s2468_s2] ss:$0 sm:$0xff] }
  0xcc   : > { %v545_v54 = vpop.permute.xlu1 %544  ;;  %554 = vst.msk [vmem:[#allocation2 + $0x84] sm:$0xf] %vm249_vm6, %v543_v51  ;;  %v1440_v52 = vld [vmem:[#allocation2 + $0x8c] sm:$0xf0]  ;;  %v1235_v51 = vrot.slane %v1202_v5, 1 }
  0xcd   : > { %578 = vst.msk [vmem:[#allocation2 + $0x84] sm:$0xf] %vm381_vm7, %v2096_v30  ;;  %v1623_v29 = vld [vmem:[#allocation2 + $0x70] sm:$0xf0]  ;;  %v1423_v30 = vor.u32 %v1619_v34, %v1420_v57  ;;  %v1443_v63 = vor.u32 %v1624_v35, %v1440_v52  ;;  %v1206_v35 = vunpack.c.l.bf16 %v1952_v36 }
  0xce   : > { %555 = vst.msk [vmem:[#allocation2 + $0x98] sm:$0xf] %vm249_vm6, %v545_v54  ;;  %v1435_v55 = vor.u32 %v1623_v29, %v1434_v23  ;;  %v1204_v29 = vunpack.c.l.bf16 %v1908_v11 }
  0xcf   : > { %1066 = vmatmul.bf16.gmra.mxu1 %v1403_v40  ;;  %579 = vst.msk [vmem:[#allocation2 + $0x98] sm:$0xf] %vm381_vm7, %v569_v14  ;;  %v1446_v58 = vld [vmem:[#allocation2 + $0x80] sm:$0xf]  ;;  %v1234_v40 = vrot.slane %v1201_v41, 1  ;;  %v1208_v41 = vunpack.c.l.bf16 %v1968_v49 }
  0xd0   : > { %v1447_v32 = vor.u32 %v1627_v59, %v1446_v58  ;;  %v1238_v58 = vrot.slane %v1204_v29, 1 }
  0xd3   : > { %1100 = vmatmul.bf16.gmra.mxu2 %v1427_v46  ;;  %v588_v47 = vpop.permute.xlu0 %587 }
  0xd4   : > { %598 = vst.msk [vmem:[#allocation2 + $0x9c] sm:$0xf] %vm249_vm6, %v588_v47  ;;  %v1625_v48 = vld [vmem:[#allocation2 + $0x84] sm:$0xf]  ;;  %v1203_v47 = vunpack.c.l.bf16 %v1875_v0 }
  0xd6   : > { %v1448_v50 = vld [vmem:[#allocation2 + $0x94] sm:$0xf0] }
  0xd7   : > { %v1451_v56 = vor.u32 %v1625_v48, %v1448_v50  ;;  %v1236_v48 = vsel %vm1233_vm9, %v1234_v40, %v1235_v51 }
  0xd9   : > { %1134 = vmatmul.bf16.gmra.mxu3 %v1451_v56 }
  0xdb   : > { %1602 = vmatmul.msk.bf16.gmra.mxu0 %vm1011_vm8, %v1435_v55  ;;  %v1628_v61 = vld [vmem:[#allocation2 + $0x98] sm:$0xf0] }
  0xdc   : > { %v1455_v16 = vor.u32 %v1628_v61, %v1454_v60 }
  0xdf   : > { %1071 = vmatmul.bf16.gmra.mxu1 %v1423_v30  ;;  %v1237_v30 = vrot.slane %v1203_v47, 1  ;;  %v1210_v47 = vunpack.c.l.bf16 %v1997_v8 }
  0xe1   : > { %v1239_v52 = vsel %vm1233_vm9, %v1237_v30, %v1238_v58  ;;  %v1247_v30 = vrot.slane %v1210_v47, 1 }
  0xe3   : > { %1105 = vmatmul.bf16.gmra.mxu2 %v1447_v32 }
  0xeb   : > { %1603 = vmatmul.msk.bf16.gmra.mxu0 %vm1011_vm8, %v1455_v16  ;;  %v1205_v16 = vunpack.c.l.bf16 %v1890_v3 }
  0xef   : > { %1076 = vmatmul.bf16.gmra.mxu1 %v1443_v63 }
 0x11c   : > { %v1038_v19 = vpop.f32.mrf.mxu1 }
 0x124   : > { %v2346_v6 = vpop.f32.mrf.mxu1  ;;  %v1120_v26 = vpop.f32.mrf.mxu3 }
 0x126   : > { %v2348_v14 = vpop.f32.mrf.mxu2  ;;  %v1033_v20 = vpop.f32.mrf.mxu0 }
 0x12c   : > { %v2350_v17 = vpop.f32.mrf.mxu1  ;;  %v1122_v31 = vpop.f32.mrf.mxu3 }
 0x12e   : > { %v2352_v18 = vpop.f32.mrf.mxu2  ;;  %v1035_v22 = vpop.f32.mrf.mxu0 }
 0x134   : > { %v2354_v27 = vpop.f32.mrf.mxu1  ;;  %v1125_v42 = vpop.f32.mrf.mxu3 }
 0x136   : > { %v1091_v28 = vpop.f32.mrf.mxu2 }
 0x138   : > { %v1149_v25 = vpop.f32.mrf.mxu0 }
 0x13c   : > { %v1062_v24 = vpop.f32.mrf.mxu1  ;;  %v1127_v63 = vpop.f32.mrf.mxu3 }
 0x13d   : > { %v1063_v37 = vadd.f32 %v1062_v24, %v1033_v20  ;;  %v1241_v24 = vrot.slane %v1206_v35, 1 }
 0x13e   : > { %v1093_v33 = vpop.f32.mrf.mxu2 }
 0x13f   : > { %v1092_v38 = vadd.f32 %v1091_v28, %v1063_v37 }
 0x140   : > { %v1151_v7 = vpop.f32.mrf.mxu0 }
 0x141   : > { %v1121_v21 = vadd.f32 %v1120_v26, %v1092_v38  ;;  %v1207_v38 = vunpack.c.l.bf16 %v1885_v2 }
 0x143   : > { %v1150_v13 = vadd.f32 %v1149_v25, %v1121_v21  ;;  %v1240_v25 = vrot.slane %v1205_v16, 1 }
 0x144   : > { %v1064_v12 = vpop.f32.mrf.mxu1  ;;  %v1130_v40 = vpop.f32.mrf.mxu3 }
 0x145   : > { %v1173_v54 = vmul.f32 %v2361_v45, %v1150_v13  ;;  %v1065_v10 = vadd.f32 %v1064_v12, %v1035_v22  ;;  %v1242_v5 = vsel %vm1233_vm9, %v1240_v25, %v1241_v24 }
 0x146   : > { %v1096_v53 = vpop.f32.mrf.mxu2 }
 0x147   : > { %v1185_v46 = vadd.f32 %v2366_v39, %v1173_v54  ;;  %v1094_v23 = vadd.f32 %v1093_v33, %v1065_v10  ;;  %v1243_v54 = vrot.slane %v1207_v38, 1  ;;  %v1244_v10 = vrot.slane %v1208_v41, 1 }
 0x148   : > { %v1154_v56 = vpop.f32.mrf.mxu0 }
 0x149   : > { %v1193_v50 = vmax.f32 %v1185_v46, 0.0  ;;  %v1123_v55 = vadd.f32 %v1122_v31, %v1094_v23  ;;  %v1209_v23 = vunpack.c.l.bf16 %v1902_v9  ;;  %v1245_v29 = vsel %vm1233_vm9, %v1243_v54, %v1244_v10 }
 0x14b   : > { %v1266_v34 = vadd.f32 %v1236_v48, %v1193_v50  ;;  %v1152_v57 = vadd.f32 %v1151_v7, %v1123_v55 }
 0x14c   : > { %v1067_v59 = vpop.f32.mrf.mxu1  ;;  %v1132_v58 = vpop.f32.mrf.mxu3 }
 0x14d   : > { %1274 = vst.msk [vmem:[%s2376_s23] sm:$0xff] %vm1011_vm8, %v1266_v34  ;;  %v1174_v32 = vmul.f32 %v2361_v45, %v1152_v57  ;;  %v1068_v0 = vadd.f32 %v1067_v59, %v1038_v19  ;;  %v1246_v57 = vrot.slane %v1209_v23, 1 }
 0x14e   : > { %v1098_v11 = vpop.f32.mrf.mxu2 }
 0x14f   : > { %v1186_v60 = vadd.f32 %v2366_v39, %v1174_v32  ;;  %v1097_v61 = vadd.f32 %v1096_v53, %v1068_v0  ;;  %v1211_v0 = vunpack.c.l.bf16 %v1878_v1 }
 0x150   : > { %v1156_v31 = vpop.f32.mrf.mxu0 }
 0x151   : > { %v1194_v20 = vmax.f32 %v1186_v60, 0.0  ;;  %v1126_v22 = vadd.f32 %v1125_v42, %v1097_v61  ;;  %v1248_v60 = vsel %vm1233_vm9, %v1246_v57, %v1247_v30 }
 0x153   : > { %v1267_v26 = vadd.f32 %v1239_v52, %v1194_v20  ;;  %v1155_v28 = vadd.f32 %v1154_v56, %v1126_v22  ;;  %v1249_v20 = vrot.slane %v1211_v0, 1 }
 0x154   : > { %v1069_v19 = vpop.f32.mrf.mxu1 }
 0x155   : > { %1275 = vst.msk [vmem:[%s2376_s23 + $0x8] sm:$0xff] %vm1011_vm8, %v1267_v26  ;;  %v1175_v37 = vmul.f32 %v2361_v45, %v1155_v28  ;;  %v1070_v3 = vadd.f32 %v1069_v19, %v2346_v6  ;;  %v1214_v19 = vunpack.c.l.bf16 %v2033_v44 }
 0x156   : > { %v1101_v7 = vpop.f32.mrf.mxu2 }
 0x157   : > { %v1187_v36 = vadd.f32 %v2366_v39, %v1175_v37  ;;  %v1099_v33 = vadd.f32 %v1098_v11, %v1070_v3  ;;  %v1212_v11 = vunpack.c.l.bf16 %v2000_v15 }
 0x158   : > { %v1159_v2 = vpop.f32.mrf.mxu0 }
 0x159   : > { %v1195_v21 = vmax.f32 %v1187_v36, 0.0  ;;  %v1128_v13 = vadd.f32 %v1127_v63, %v1099_v33  ;;  %v1250_v22 = vrot.slane %v1212_v11, 1 }
 0x15b   : > { %v1268_v51 = vadd.f32 %v1242_v5, %v1195_v21  ;;  %v1157_v12 = vadd.f32 %v1156_v31, %v1128_v13  ;;  %v1213_v31 = vunpack.c.l.bf16 %v1893_v4  ;;  %v1251_v37 = vsel %vm1233_vm9, %v1249_v20, %v1250_v22 }
 0x15c   : > { %v1072_v53 = vpop.f32.mrf.mxu1  ;;  %v1135_v25 = vpop.f32.mrf.mxu3 }
 0x15d   : > { %1276 = vst.msk [vmem:[%s2376_s23 + $0x10] sm:$0xff] %vm1011_vm8, %v1268_v51  ;;  %v1176_v6 = vmul.f32 %v2361_v45, %v1157_v12  ;;  %v1073_v42 = vadd.f32 %v1072_v53, %v2350_v17  ;;  %v1252_v5 = vrot.slane %v1213_v31, 1  ;;  %v1215_v51 = vunpack.c.l.bf16 %v2030_v43 }
 0x15e   : > { %v1103_v55 = vpop.f32.mrf.mxu2  ;;  %v1216_v12 = vunpack.c.l.bf16 %v2061_v62 }
 0x15f   : > { %v1188_v49 = vadd.f32 %v2366_v39, %v1176_v6  ;;  %v1102_v46 = vadd.f32 %v1101_v7, %v1073_v42  ;;  %v1253_v7 = vrot.slane %v1214_v19, 1 }
 0x160   : > { %v1161_v61 = vpop.f32.mrf.mxu0 }
 0x161   : > { %v1196_v48 = vmax.f32 %v1188_v49, 0.0  ;;  %v1131_v50 = vadd.f32 %v1130_v40, %v1102_v46  ;;  %v1254_v54 = vsel %vm1233_vm9, %v1252_v5, %v1253_v7  ;;  %v1255_v49 = vrot.slane %v1215_v51, 1 }
 0x162   : > { %v1256_v46 = vrot.slane %v1216_v12, 1 }
 0x163   : > { %v1269_v56 = vadd.f32 %v1245_v29, %v1196_v48  ;;  %v1160_v34 = vadd.f32 %v1159_v2, %v1131_v50 }
 0x164   : > { %v1074_v17 = vpop.f32.mrf.mxu1  ;;  %v1137_v10 = vpop.f32.mrf.mxu3  ;;  %v1257_v23 = vsel %vm1233_vm9, %v1255_v49, %v1256_v46 }
 0x165   : > { %1277 = vst.msk [vmem:[%s2376_s23 + $0x18] sm:$0xff] %vm1011_vm8, %v1269_v56  ;;  %v1177_v59 = vmul.f32 %v2361_v45, %v1160_v34  ;;  %v1075_v9 = vadd.f32 %v1074_v17, %v2354_v27 }
 0x166   : > { %v1106_v26 = vpop.f32.mrf.mxu2 }
 0x167   : > { %v1189_v8 = vadd.f32 %v2366_v39, %v1177_v59  ;;  %v1104_v32 = vadd.f32 %v1103_v55, %v1075_v9 }
 0x168   : > { %v1164_v3 = vpop.f32.mrf.mxu0 }
 0x169   : > { %v1197_v16 = vmax.f32 %v1189_v8, 0.0  ;;  %v1133_v35 = vadd.f32 %v1132_v58, %v1104_v32 }
 0x16b   : > { %v1270_v52 = vadd.f32 %v1248_v60, %v1197_v16  ;;  %v1162_v63 = vadd.f32 %v1161_v61, %v1133_v35 }
 0x16c   : > { %v1077_v28 = vpop.f32.mrf.mxu1 }
 0x16d   : > { %1278 = vst.msk [vmem:[%s2376_s23 + $0x20] sm:$0xff] %vm1011_vm8, %v1270_v52  ;;  %v1178_v27 = vmul.f32 %v2361_v45, %v1162_v63  ;;  %v1078_v1 = vadd.f32 %v1077_v28, %v2348_v14 }
 0x16e   : > { %v1108_v4 = vpop.f32.mrf.mxu2 }
 0x16f   : > { %v1190_v15 = vadd.f32 %v2366_v39, %v1178_v27  ;;  %v1107_v24 = vadd.f32 %v1106_v26, %v1078_v1 }
 0x170   : > { %v1166_v42 = vpop.f32.mrf.mxu0 }
 0x171   : > { %v1198_v36 = vmax.f32 %v1190_v15, 0.0  ;;  %v1136_v33 = vadd.f32 %v1135_v25, %v1107_v24 }
 0x173   : > { %v1271_v38 = vadd.f32 %v1251_v37, %v1198_v36  ;;  %v1165_v41 = vadd.f32 %v1164_v3, %v1136_v33 }
 0x174   : > { %v1079_v21 = vpop.f32.mrf.mxu1 }
 0x175   : > { %1279 = vst.msk [vmem:[%s2376_s23 + $0x28] sm:$0xff] %vm1011_vm8, %v1271_v38  ;;  %v1179_v14 = vmul.f32 %v2361_v45, %v1165_v41  ;;  %v1080_v13 = vadd.f32 %v1079_v21, %v2352_v18 }
 0x177   : > { %v1191_v44 = vadd.f32 %v2366_v39, %v1179_v14  ;;  %v1109_v40 = vadd.f32 %v1108_v4, %v1080_v13 }
 0x179   : > { %v1199_v53 = vmax.f32 %v1191_v44, 0.0  ;;  %v1138_v6 = vadd.f32 %v1137_v10, %v1109_v40 }
 0x17b   : > { %v1272_v2 = vadd.f32 %v1254_v54, %v1199_v53  ;;  %v1167_v18 = vadd.f32 %v1166_v42, %v1138_v6 }
 0x17d   : > { %1280 = vst.msk [vmem:[%s2376_s23 + $0x30] sm:$0xff] %vm1011_vm8, %v1272_v2  ;;  %v1180_v43 = vmul.f32 %v2361_v45, %v1167_v18 }
 0x17f   : > { %v1192_v62 = vadd.f32 %v2366_v39, %v1180_v43 }
 0x181   : > { %v1200_v47 = vmax.f32 %v1192_v62, 0.0 }
 0x183   : > { %v1273_v29 = vadd.f32 %v1257_v23, %v1200_v47 }
 0x185   : > { %1281 = vst.msk [vmem:[%s2376_s23 + $0x38] sm:$0xff] %vm1011_vm8, %v1273_v29 }
 0x186   : > { %1754 = shalt.err (!%p1751_p3)
}
 0x187   : > { %s1792_s14 = smov 128   ;;  %s1793_s20 = smov 8  }
 0x188   : > { %1683 = dma.vmem_to_hbm [thread:$0]  (%p1857_p5), %s1296_s5, 1024, %s1298_s19, %s1283_s7, %s1792_s14, %s1792_s14, %s1793_s20  }
 0x189 PF: > { %p1689_p4 = scmp.ge.s32.totalorder %s1789_s18, 2  ;;  %s1312_s22 = sand.u32 1, %s1777_s15  }
 0x18a   : > { %s1313_s23 = scalar_lea.sflag [#allocation4], %s1312_s22 }
 0x18b   : > { %p1686_p7 = pnand %p1689_p4, %p1861_p6 }
 0x18d   : > { %p1687_p8 = pneg %p1686_p7 }
 0x18f   : > { %1772 = dma.done.wait (%p1687_p8), %s1313_s23, 1024  }
 0x190   : > { %1774 = vsyncadd (%p1687_p8), %s1313_s23, 4294966272  ;;  %p14_p9 = scmp.ge.s32.totalorder %s1844_s21, 4   ;;  %s2477_s15 = smov %s1781_s16 }
 0x191   : > { %s2478_s16 = smov %s1785_s17  ;;  %s2479_s17 = smov %s1855_s24 }
 0x192   : > { %s2480_s18 = smov %s1844_s21  ;;  %16 = sbr.rel (!%p14_p9) target bundleno = 3 (0x3), region = 71 }
 0x197   :  { %1319 = vsyncpa [#allocation4], 1 }
 0x198   :  { %1321 = vsyncpa [#allocation4 + $0x1], 1 }

</bundles_post_ra>
